<compile_context>
chip_gen: v7x
topology: tpu7x:2x2x1
jax: 0.10.0
libtpu: 0.0.40
codegen_flags: <defaults>
</compile_context>

<pallas_src>
import functools
import numpy as np
import jax
import jax.numpy as jnp
from jax.experimental import pallas as pl
from jax.experimental.pallas import tpu as pltpu


# ---------------------------------------------------------------------------
# Fused FPN kernel
# ---------------------------------------------------------------------------

def _fpn_fused_kernel(
    # flattened inputs (N*L_k, C_k), bf16
    x3_ref, x4_ref, x5_ref, x6_ref,
    # lateral 1x1 conv weights (C_k, F) bf16 and biases (1, F) f32
    w3l_ref, b3l_ref, w4l_ref, b4l_ref, w5l_ref, b5l_ref, w6l_ref, b6l_ref,
    # output 3-tap conv weights stacked (3, F, F) bf16 and biases (1, F) f32
    w3o_ref, b3o_ref, w4o_ref, b4o_ref, w5o_ref, b5o_ref, w6o_ref, b6o_ref,
    # outputs (N*L_k, F) f32
    p3_ref, p4_ref, p5_ref, p6_ref,
    # f32 halo scratch, shape (M3 + 2, F)
    halo_ref,
    *, batch: int):
  f32 = jnp.float32
  bf16 = jnp.bfloat16

  def lateral(x_ref, w_ref, b_ref):
    # 1x1 Conv1d == bf16 channel matmul over the flattened (N*L) rows, f32 acc.
    return jnp.dot(x_ref[...], w_ref[...], preferred_element_type=f32) + b_ref[...]

  def upsample2(p):
    # nearest-2x along L in the flattened (N*L, F) layout: out[r] = p[r // 2].
    # Since L_k = 2 * L_{k+1}, r // 2 never crosses a sample boundary.
    # bf16 0/1 selection matmul (exact), tiny at toy sizes.
    # TODO(synk): linear-cost per-tile interleave for production L.
    mp = p.shape[0]
    m = 2 * mp
    r = jax.lax.broadcasted_iota(jnp.int32, (m, mp), 0)
    c = jax.lax.broadcasted_iota(jnp.int32, (m, mp), 1)
    d = r - 2 * c
    sel = ((d == 0) | (d == 1)).astype(bf16)          # 0/1 selection matrix
    return jnp.dot(sel, p.astype(bf16), preferred_element_type=f32)

  def conv3(pre, w_ref, b_ref, out_ref):
    # Conv1d k=3, pad=1 as three accumulated K=F bf16 matmuls.  The +/-1
    # neighbours are produced by staging `pre` once into the VMEM halo scratch
    # at rows [1, M+1) and re-reading it at row offsets 0 and 2; rows that
    # would cross a per-sample boundary are zeroed with one modulo mask
    # (the never-written halo rows are covered by the same mask).
    m, fc = pre.shape
    per = m // batch
    pb = pre.astype(bf16)
    halo_ref[pl.ds(1, m), :] = pre                    # single staging store (f32)
    left = halo_ref[pl.ds(0, m), :]                   # row r -> pre[r - 1]
    right = halo_ref[pl.ds(2, m), :]                  # row r -> pre[r + 1]
    row = jax.lax.broadcasted_iota(jnp.int32, (m, fc), 0)
    left = jnp.where((row % per) != 0, left, 0.0).astype(bf16)
    right = jnp.where((row % per) != (per - 1), right, 0.0).astype(bf16)
    acc = jnp.dot(pb, w_ref[1], preferred_element_type=f32)       # center tap
    acc += jnp.dot(left, w_ref[0], preferred_element_type=f32)    # left tap
    acc += jnp.dot(right, w_ref[2], preferred_element_type=f32)   # right tap
    out_ref[...] = acc + b_ref[...]

  # Top-down pyramid; every intermediate stays in VMEM / vregs.
  p6_pre = lateral(x6_ref, w6l_ref, b6l_ref)
  conv3(p6_pre, w6o_ref, b6o_ref, p6_ref)
  p5_pre = lateral(x5_ref, w5l_ref, b5l_ref) + upsample2(p6_pre)
  conv3(p5_pre, w5o_ref, b5o_ref, p5_ref)
  p4_pre = lateral(x4_ref, w4l_ref, b4l_ref) + upsample2(p5_pre)
  conv3(p4_pre, w4o_ref, b4o_ref, p4_ref)
  p3_pre = lateral(x3_ref, w3l_ref, b3l_ref) + upsample2(p4_pre)
  conv3(p3_pre, w3o_ref, b3o_ref, p3_ref)


# ---------------------------------------------------------------------------
# Wrapper: layout glue + weight preprocessing + single pallas_call
# ---------------------------------------------------------------------------

def fpn_forward(inputs_ncl, params):
  C3, C4, C5, C6, C7 = inputs_ncl                    # PyTorch (N, C, L) layout
  N = C3.shape[0]
  Fc = params["P6_1_w"].shape[0]
  bf16 = jnp.bfloat16

  # TODO(synk): accept (N, L, C)-native inputs / emit (N, L, F) for production L
  # so these HBM relayout passes disappear; at L3=32 lanes would be underfilled
  # in the flipped orientation, so keep channels-on-lanes here.
  def to_flat(x):                                    # (N, C, L) -> (N*L, C) bf16
    n, c, l = x.shape
    return jnp.transpose(x.astype(bf16), (0, 2, 1)).reshape(n * l, c), l

  x3, L3 = to_flat(C3)
  x4, L4 = to_flat(C4)
  x5, L5 = to_flat(C5)
  x6, L6 = to_flat(C6)
  assert L5 == 2 * L6 and L4 == 2 * L5 and L3 == 2 * L4, \
      "FPN requires each level to be 2x the length of the level above"

  wt = lambda w: jnp.transpose(w, (1, 0)).astype(bf16)     # (F, Cin) -> (Cin, F)

  def wstack(w):                                     # (F, F, 3) -> (3, F, F); [k] = W[:,:,k].T
    return jnp.stack([jnp.transpose(w[:, :, k], (1, 0)) for k in range(3)],
                     axis=0).astype(bf16)

  b2 = lambda b: b.reshape(1, -1).astype(jnp.float32)

  args = [
      x3, x4, x5, x6,
      wt(params["P3_1_w"]), b2(params["P3_1_b"]),
      wt(params["P4_1_w"]), b2(params["P4_1_b"]),
      wt(params["P5_1_w"]), b2(params["P5_1_b"]),
      wt(params["P6_1_w"]), b2(params["P6_1_b"]),
      wstack(params["P3_2_w"]), b2(params["P3_2_b"]),
      wstack(params["P4_2_w"]), b2(params["P4_2_b"]),
      wstack(params["P5_2_w"]), b2(params["P5_2_b"]),
      wstack(params["P6_2_w"]), b2(params["P6_2_b"]),
  ]

  Ms = [x3.shape[0], x4.shape[0], x5.shape[0], x6.shape[0]]

  # Advisory cost estimate (laterals + 3-tap convs + toy upsample matmuls).
  flops = 0
  for xf in (x3, x4, x5, x6):
    m, cin = xf.shape
    flops += 2 * m * cin * Fc + 3 * 2 * m * Fc * Fc
  for m in Ms[:3]:
    flops += 2 * m * (m // 2) * Fc
  bytes_accessed = (sum(int(a.size) * a.dtype.itemsize for a in args)
                    + sum(m * Fc * 4 for m in Ms))

  out_shape = tuple(jax.ShapeDtypeStruct((m, Fc), jnp.float32) for m in Ms)
  vmem_spec = pl.BlockSpec(memory_space=pltpu.MemorySpace.VMEM)

  # Single grid point: the whole toy pyramid (<1 MiB) is VMEM-resident.
  # TODO(synk): for production L, add a row-tiled ("parallel", ...) grid with a
  # +/-1-row halo per tile so v7x's two TensorCores split the work and the
  # working set stops being fully resident.
  p3f, p4f, p5f, p6f = pl.pallas_call(
      functools.partial(_fpn_fused_kernel, batch=N),
      out_shape=out_shape,
      in_specs=[vmem_spec] * len(args),
      out_specs=tuple([vmem_spec] * 4),
      scratch_shapes=[pltpu.VMEM((Ms[0] + 2, Fc), jnp.float32)],
      compiler_params=pltpu.CompilerParams(vmem_limit_bytes=32 * 1024 * 1024),
      cost_estimate=pl.CostEstimate(flops=int(flops), transcendentals=0,
                                    bytes_accessed=int(bytes_accessed)),
  )(*args)

  def back(pf, L):                                   # (N*L, F) -> (N, F, L)
    return jnp.transpose(pf.reshape(N, L, Fc), (0, 2, 1))

  return [back(p3f, L3), back(p4f, L4), back(p5f, L5), back(p6f, L6), C7]


# ---------------------------------------------------------------------------
# Pure-JAX f32 reference (for correctness check)
# ---------------------------------------------------------------------------

def _conv1x1_ref(x_nlc, w_fc, b_f):
  return jnp.einsum("nlc,fc->nlf", x_nlc, w_fc) + b_f


def _conv3_ref(x_nlf, w_ffk, b_f):
  L = x_nlf.shape[1]
  xp = jnp.pad(x_nlf, ((0, 0), (1, 1), (0, 0)))
  y = b_f
  for k in range(3):
    y = y + jnp.einsum("nlc,fc->nlf", xp[:, k:k + L, :], w_ffk[:, :, k])
  return y


def fpn_forward_ref(inputs_ncl, params):
  C3, C4, C5, C6, C7 = inputs_ncl
  t = lambda x: jnp.transpose(x, (0, 2, 1))
  c3, c4, c5, c6 = t(C3), t(C4), t(C5), t(C6)

  p6_pre = _conv1x1_ref(c6, params["P6_1_w"], params["P6_1_b"])
  p6_up = jnp.repeat(p6_pre, 2, axis=1)
  p6 = _conv3_ref(p6_pre, params["P6_2_w"], params["P6_2_b"])

  p5_pre = _conv1x1_ref(c5, params["P5_1_w"], params["P5_1_b"]) + p6_up
  p5_up = jnp.repeat(p5_pre, 2, axis=1)
  p5 = _conv3_ref(p5_pre, params["P5_2_w"], params["P5_2_b"])

  p4_pre = _conv1x1_ref(c4, params["P4_1_w"], params["P4_1_b"]) + p5_up
  p4_up = jnp.repeat(p4_pre, 2, axis=1)
  p4 = _conv3_ref(p4_pre, params["P4_2_w"], params["P4_2_b"])

  p3_pre = _conv1x1_ref(c3, params["P3_1_w"], params["P3_1_b"]) + p4_up
  p3 = _conv3_ref(p3_pre, params["P3_2_w"], params["P3_2_b"])

  return [t(p3), t(p4), t(p5), t(p6), C7]


# ---------------------------------------------------------------------------
# Deterministic parameter / input construction and main
# ---------------------------------------------------------------------------

def make_params(key, C3_size, C4_size, C5_size, C6_size, feature_channel):
  ks = jax.random.split(key, 18)
  i = iter(range(18))
  nrm = lambda k, shape: (0.05 * jax.random.normal(k, shape)).astype(jnp.float32)
  p = {}
  # lateral 1x1 convs: PyTorch weight (F, Cin, 1) stored squeezed as (F, Cin)
  p["P6_1_w"] = nrm(ks[next(i)], (feature_channel, C6_size))
  p["P6_1_b"] = nrm(ks[next(i)], (feature_channel,))
  p["P5_1_w"] = nrm(ks[next(i)], (feature_channel, C5_size))
  p["P5_1_b"] = nrm(ks[next(i)], (feature_channel,))
  p["P4_1_w"] = nrm(ks[next(i)], (feature_channel, C4_size))
  p["P4_1_b"] = nrm(ks[next(i)], (feature_channel,))
  p["P3_1_w"] = nrm(ks[next(i)], (feature_channel, C3_size))
  p["P3_1_b"] = nrm(ks[next(i)], (feature_channel,))
  # output 3-tap convs: PyTorch weight (F, F, 3)
  for name in ("P6_2", "P5_2", "P4_2", "P3_2"):
    p[name + "_w"] = nrm(ks[next(i)], (feature_channel, feature_channel, 3))
    p[name + "_b"] = nrm(ks[next(i)], (feature_channel,))
  return p


if __name__ == "__main__":
  # Small shapes consistent with an FPN pyramid (each level halves L).
  N = 2
  C3_size, C4_size, C5_size, C6_size = 8, 16, 32, 64
  feature_channel = 128
  L3, L4, L5, L6, L7 = 32, 16, 8, 4, 2

  key = jax.random.PRNGKey(0)
  kp, k3, k4, k5, k6, k7 = jax.random.split(key, 6)
  params = make_params(kp, C3_size, C4_size, C5_size, C6_size, feature_channel)

  # Inputs are given in PyTorch (N, C, L) layout.
  C3 = jax.random.normal(k3, (N, C3_size, L3), jnp.float32)
  C4 = jax.random.normal(k4, (N, C4_size, L4), jnp.float32)
  C5 = jax.random.normal(k5, (N, C5_size, L5), jnp.float32)
  C6 = jax.random.normal(k6, (N, C6_size, L6), jnp.float32)
  C7 = jax.random.normal(k7, (N, feature_channel, L7), jnp.float32)
  inputs = (C3, C4, C5, C6, C7)

  outs = fpn_forward(inputs, params)
  outs = jax.block_until_ready(outs)

  refs = fpn_forward_ref(inputs, params)
  # Kernel runs the data matmuls in bf16 (f32 accumulation) on a chained
  # 4-level pyramid, so per-element errors of O(1e-2) vs the f32 reference are
  # expected; structural bugs (wrong tap, missing bias, boundary leakage) are
  # O(0.1+) and still fail this tolerance.
  for o, r in zip(outs, refs):
    assert o.shape == r.shape and o.dtype == r.dtype
    np.testing.assert_allclose(np.asarray(o), np.asarray(r), atol=3e-2, rtol=3e-2)

  print("KERNEL_OK")
</pallas_src>

<mosaic_0001>
module attributes {stable_mosaic.version = 11 : i64} {
  func.func @_fpn_fused_kernel(%arg0: memref<64x8xbf16, #tpu.memory_space<vmem>>, %arg1: memref<32x16xbf16, #tpu.memory_space<vmem>>, %arg2: memref<16x32xbf16, #tpu.memory_space<vmem>>, %arg3: memref<8x64xbf16, #tpu.memory_space<vmem>>, %arg4: memref<8x128xbf16, #tpu.memory_space<vmem>>, %arg5: memref<1x128xf32, #tpu.memory_space<vmem>>, %arg6: memref<16x128xbf16, #tpu.memory_space<vmem>>, %arg7: memref<1x128xf32, #tpu.memory_space<vmem>>, %arg8: memref<32x128xbf16, #tpu.memory_space<vmem>>, %arg9: memref<1x128xf32, #tpu.memory_space<vmem>>, %arg10: memref<64x128xbf16, #tpu.memory_space<vmem>>, %arg11: memref<1x128xf32, #tpu.memory_space<vmem>>, %arg12: memref<3x128x128xbf16, #tpu.memory_space<vmem>>, %arg13: memref<1x128xf32, #tpu.memory_space<vmem>>, %arg14: memref<3x128x128xbf16, #tpu.memory_space<vmem>>, %arg15: memref<1x128xf32, #tpu.memory_space<vmem>>, %arg16: memref<3x128x128xbf16, #tpu.memory_space<vmem>>, %arg17: memref<1x128xf32, #tpu.memory_space<vmem>>, %arg18: memref<3x128x128xbf16, #tpu.memory_space<vmem>>, %arg19: memref<1x128xf32, #tpu.memory_space<vmem>>, %arg20: memref<64x128xf32, #tpu.memory_space<vmem>>, %arg21: memref<32x128xf32, #tpu.memory_space<vmem>>, %arg22: memref<16x128xf32, #tpu.memory_space<vmem>>, %arg23: memref<8x128xf32, #tpu.memory_space<vmem>>, %arg24: memref<66x128xf32, #tpu.memory_space<vmem>>) attributes {dimension_semantics = [], scalar_prefetch = 0 : i64, scratch_operands = 1 : i64, tpu.core_type = #tpu.core_type<tc>} {
    %c0 = arith.constant 0 : index
    %c0_0 = arith.constant 0 : index
    %0 = vector.load %arg3[%c0, %c0_0] : memref<8x64xbf16, #tpu.memory_space<vmem>>, vector<8x64xbf16>
    %c0_1 = arith.constant 0 : index
    %c0_2 = arith.constant 0 : index
    %1 = vector.load %arg10[%c0_1, %c0_2] : memref<64x128xbf16, #tpu.memory_space<vmem>>, vector<64x128xbf16>
    %cst = arith.constant dense<0.000000e+00> : vector<8x128xf32>
    %2 = tpu.matmul %0, %1, %cst {dimension_numbers = #tpu.dot_dimension_numbers<[1], [0], [0], [1], [0, 0, 1, 1], [], []>} : vector<8x64xbf16>, vector<64x128xbf16>, vector<8x128xf32> -> vector<8x128xf32>
    %c0_3 = arith.constant 0 : index
    %c0_4 = arith.constant 0 : index
    %3 = vector.load %arg11[%c0_3, %c0_4] : memref<1x128xf32, #tpu.memory_space<vmem>>, vector<1x128xf32>
    %4 = vector.broadcast %3 : vector<1x128xf32> to vector<8x128xf32>
    %5 = arith.addf %2, %4 : vector<8x128xf32>
    %6 = arith.truncf %5 : vector<8x128xf32> to vector<8x128xbf16>
    %c1 = arith.constant 1 : index
    %c0_5 = arith.constant 0 : index
    %7 = vector.load %arg24[%c1, %c0_5] : memref<66x128xf32, #tpu.memory_space<vmem>>, vector<8x128xf32>
    tpu.vector_store %arg24[%c1, %c0_5], %5 {strides = array<i32>} : memref<66x128xf32, #tpu.memory_space<vmem>>, vector<8x128xf32>,
    %c0_6 = arith.constant 0 : index
    %c0_7 = arith.constant 0 : index
    %8 = vector.load %arg24[%c0_6, %c0_7] : memref<66x128xf32, #tpu.memory_space<vmem>>, vector<8x128xf32>
    %c2 = arith.constant 2 : index
    %c0_8 = arith.constant 0 : index
    %9 = vector.load %arg24[%c2, %c0_8] : memref<66x128xf32, #tpu.memory_space<vmem>>, vector<8x128xf32>
    %10 = tpu.iota {dimensions = array<i32: 0>} : vector<8x128xi32>
    %c4_i32 = arith.constant 4 : i32
    %c0_i32 = arith.constant 0 : i32
    %11 = arith.cmpi eq, %c4_i32, %c0_i32 : i32
    %c1_i32 = arith.constant 1 : i32
    %12 = arith.select %11, %c1_i32, %c4_i32 : i32
    %13 = vector.broadcast %12 : i32 to vector<8x128xi32>
    %14 = arith.remsi %10, %13 : vector<8x128xi32>
    %c0_i32_9 = arith.constant 0 : i32
    %15 = vector.broadcast %c0_i32_9 : i32 to vector<8x128xi32>
    %16 = arith.cmpi ne, %14, %15 : vector<8x128xi32>
    %c0_i32_10 = arith.constant 0 : i32
    %17 = vector.broadcast %c0_i32_10 : i32 to vector<8x128xi32>
    %18 = arith.cmpi slt, %14, %17 : vector<8x128xi32>
    %c0_i32_11 = arith.constant 0 : i32
    %19 = arith.cmpi slt, %12, %c0_i32_11 : i32
    %20 = vector.broadcast %19 : i1 to vector<8x128xi1>
    %21 = vector.broadcast %20 : vector<8x128xi1> to vector<8x128xi1>
    %22 = arith.xori %18, %21 : vector<8x128xi1>
    %23 = arith.andi %22, %16 : vector<8x128xi1>
    %24 = vector.broadcast %12 : i32 to vector<8x128xi32>
    %25 = arith.addi %14, %24 : vector<8x128xi32>
    %26 = arith.select %23, %25, %14 : vector<8x128xi1>, vector<8x128xi32>
    %c0_i32_12 = arith.constant 0 : i32
    %27 = vector.broadcast %c0_i32_12 : i32 to vector<8x128xi32>
    %28 = arith.cmpi ne, %26, %27 : vector<8x128xi32>
    %cst_13 = arith.constant 0.000000e+00 : f32
    %29 = vector.broadcast %cst_13 : f32 to vector<8x128xf32>
    %30 = arith.select %28, %8, %29 : vector<8x128xi1>, vector<8x128xf32>
    %31 = arith.truncf %30 : vector<8x128xf32> to vector<8x128xbf16>
    %c4_i32_14 = arith.constant 4 : i32
    %c0_i32_15 = arith.constant 0 : i32
    %32 = arith.cmpi eq, %c4_i32_14, %c0_i32_15 : i32
    %c1_i32_16 = arith.constant 1 : i32
    %33 = arith.select %32, %c1_i32_16, %c4_i32_14 : i32
    %34 = vector.broadcast %33 : i32 to vector<8x128xi32>
    %35 = arith.remsi %10, %34 : vector<8x128xi32>
    %c0_i32_17 = arith.constant 0 : i32
    %36 = vector.broadcast %c0_i32_17 : i32 to vector<8x128xi32>
    %37 = arith.cmpi ne, %35, %36 : vector<8x128xi32>
    %c0_i32_18 = arith.constant 0 : i32
    %38 = vector.broadcast %c0_i32_18 : i32 to vector<8x128xi32>
    %39 = arith.cmpi slt, %35, %38 : vector<8x128xi32>
    %c0_i32_19 = arith.constant 0 : i32
    %40 = arith.cmpi slt, %33, %c0_i32_19 : i32
    %41 = vector.broadcast %40 : i1 to vector<8x128xi1>
    %42 = vector.broadcast %41 : vector<8x128xi1> to vector<8x128xi1>
    %43 = arith.xori %39, %42 : vector<8x128xi1>
    %44 = arith.andi %43, %37 : vector<8x128xi1>
    %45 = vector.broadcast %33 : i32 to vector<8x128xi32>
    %46 = arith.addi %35, %45 : vector<8x128xi32>
    %47 = arith.select %44, %46, %35 : vector<8x128xi1>, vector<8x128xi32>
    %c3_i32 = arith.constant 3 : i32
    %48 = vector.broadcast %c3_i32 : i32 to vector<8x128xi32>
    %49 = arith.cmpi ne, %47, %48 : vector<8x128xi32>
    %cst_20 = arith.constant 0.000000e+00 : f32
    %50 = vector.broadcast %cst_20 : f32 to vector<8x128xf32>
    %51 = arith.select %49, %9, %50 : vector<8x128xi1>, vector<8x128xf32>
    %52 = arith.truncf %51 : vector<8x128xf32> to vector<8x128xbf16>
    %c1_21 = arith.constant 1 : index
    %c0_22 = arith.constant 0 : index
    %c0_23 = arith.constant 0 : index
    %53 = vector.load %arg18[%c1_21, %c0_22, %c0_23] : memref<3x128x128xbf16, #tpu.memory_space<vmem>>, vector<1x128x128xbf16>
    %54 = vector.shape_cast %53 : vector<1x128x128xbf16> to vector<128x128xbf16>
    %cst_24 = arith.constant dense<0.000000e+00> : vector<8x128xf32>
    %55 = tpu.matmul %6, %54, %cst_24 {dimension_numbers = #tpu.dot_dimension_numbers<[1], [0], [0], [1], [0, 0, 1, 1], [], []>} : vector<8x128xbf16>, vector<128x128xbf16>, vector<8x128xf32> -> vector<8x128xf32>
    %c0_25 = arith.constant 0 : index
    %c0_26 = arith.constant 0 : index
    %c0_27 = arith.constant 0 : index
    %56 = vector.load %arg18[%c0_25, %c0_26, %c0_27] : memref<3x128x128xbf16, #tpu.memory_space<vmem>>, vector<1x128x128xbf16>
    %57 = vector.shape_cast %56 : vector<1x128x128xbf16> to vector<128x128xbf16>
    %cst_28 = arith.constant dense<0.000000e+00> : vector<8x128xf32>
    %58 = tpu.matmul %31, %57, %cst_28 {dimension_numbers = #tpu.dot_dimension_numbers<[1], [0], [0], [1], [0, 0, 1, 1], [], []>} : vector<8x128xbf16>, vector<128x128xbf16>, vector<8x128xf32> -> vector<8x128xf32>
    %59 = arith.addf %55, %58 : vector<8x128xf32>
    %c2_29 = arith.constant 2 : index
    %c0_30 = arith.constant 0 : index
    %c0_31 = arith.constant 0 : index
    %60 = vector.load %arg18[%c2_29, %c0_30, %c0_31] : memref<3x128x128xbf16, #tpu.memory_space<vmem>>, vector<1x128x128xbf16>
    %61 = vector.shape_cast %60 : vector<1x128x128xbf16> to vector<128x128xbf16>
    %cst_32 = arith.constant dense<0.000000e+00> : vector<8x128xf32>
    %62 = tpu.matmul %52, %61, %cst_32 {dimension_numbers = #tpu.dot_dimension_numbers<[1], [0], [0], [1], [0, 0, 1, 1], [], []>} : vector<8x128xbf16>, vector<128x128xbf16>, vector<8x128xf32> -> vector<8x128xf32>
    %63 = arith.addf %59, %62 : vector<8x128xf32>
    %c0_33 = arith.constant 0 : index
    %c0_34 = arith.constant 0 : index
    %64 = vector.load %arg19[%c0_33, %c0_34] : memref<1x128xf32, #tpu.memory_space<vmem>>, vector<1x128xf32>
    %65 = vector.broadcast %64 : vector<1x128xf32> to vector<8x128xf32>
    %66 = arith.addf %63, %65 : vector<8x128xf32>
    %c0_35 = arith.constant 0 : index
    %c0_36 = arith.constant 0 : index
    %67 = vector.load %arg23[%c0_35, %c0_36] : memref<8x128xf32, #tpu.memory_space<vmem>>, vector<8x128xf32>
    tpu.vector_store %arg23[%c0_35, %c0_36], %66 {strides = array<i32>} : memref<8x128xf32, #tpu.memory_space<vmem>>, vector<8x128xf32>,
    %c0_37 = arith.constant 0 : index
    %c0_38 = arith.constant 0 : index
    %68 = vector.load %arg2[%c0_37, %c0_38] : memref<16x32xbf16, #tpu.memory_space<vmem>>, vector<16x32xbf16>
    %c0_39 = arith.constant 0 : index
    %c0_40 = arith.constant 0 : index
    %69 = vector.load %arg8[%c0_39, %c0_40] : memref<32x128xbf16, #tpu.memory_space<vmem>>, vector<32x128xbf16>
    %cst_41 = arith.constant dense<0.000000e+00> : vector<16x128xf32>
    %70 = tpu.matmul %68, %69, %cst_41 {dimension_numbers = #tpu.dot_dimension_numbers<[1], [0], [0], [1], [0, 0, 1, 1], [], []>} : vector<16x32xbf16>, vector<32x128xbf16>, vector<16x128xf32> -> vector<16x128xf32>
    %c0_42 = arith.constant 0 : index
    %c0_43 = arith.constant 0 : index
    %71 = vector.load %arg9[%c0_42, %c0_43] : memref<1x128xf32, #tpu.memory_space<vmem>>, vector<1x128xf32>
    %72 = vector.broadcast %71 : vector<1x128xf32> to vector<16x128xf32>
    %73 = arith.addf %70, %72 : vector<16x128xf32>
    %74 = tpu.iota {dimensions = array<i32: 0>} : vector<16x8xi32>
    %75 = tpu.iota {dimensions = array<i32: 1>} : vector<16x8xi32>
    %c2_i32 = arith.constant 2 : i32
    %76 = vector.broadcast %c2_i32 : i32 to vector<16x8xi32>
    %77 = arith.muli %76, %75 : vector<16x8xi32>
    %78 = arith.subi %74, %77 : vector<16x8xi32>
    %c0_i32_44 = arith.constant 0 : i32
    %79 = vector.broadcast %c0_i32_44 : i32 to vector<16x8xi32>
    %80 = arith.cmpi eq, %78, %79 : vector<16x8xi32>
    %c1_i32_45 = arith.constant 1 : i32
    %81 = vector.broadcast %c1_i32_45 : i32 to vector<16x8xi32>
    %82 = arith.cmpi eq, %78, %81 : vector<16x8xi32>
    %83 = arith.ori %80, %82 : vector<16x8xi1>
    %84 = arith.extui %83 : vector<16x8xi1> to vector<16x8xi32>
    %85 = arith.sitofp %84 : vector<16x8xi32> to vector<16x8xf32>
    %86 = arith.truncf %85 : vector<16x8xf32> to vector<16x8xbf16>
    %87 = arith.truncf %5 : vector<8x128xf32> to vector<8x128xbf16>
    %cst_46 = arith.constant dense<0.000000e+00> : vector<16x128xf32>
    %88 = tpu.matmul %86, %87, %cst_46 {dimension_numbers = #tpu.dot_dimension_numbers<[1], [0], [0], [1], [0, 0, 1, 1], [], []>} : vector<16x8xbf16>, vector<8x128xbf16>, vector<16x128xf32> -> vector<16x128xf32>
    %89 = arith.addf %73, %88 : vector<16x128xf32>
    %90 = arith.truncf %89 : vector<16x128xf32> to vector<16x128xbf16>
    %c1_47 = arith.constant 1 : index
    %c0_48 = arith.constant 0 : index
    %91 = vector.load %arg24[%c1_47, %c0_48] : memref<66x128xf32, #tpu.memory_space<vmem>>, vector<16x128xf32>
    tpu.vector_store %arg24[%c1_47, %c0_48], %89 {strides = array<i32>} : memref<66x128xf32, #tpu.memory_space<vmem>>, vector<16x128xf32>,
    %c0_49 = arith.constant 0 : index
    %c0_50 = arith.constant 0 : index
    %92 = vector.load %arg24[%c0_49, %c0_50] : memref<66x128xf32, #tpu.memory_space<vmem>>, vector<16x128xf32>
    %c2_51 = arith.constant 2 : index
    %c0_52 = arith.constant 0 : index
    %93 = vector.load %arg24[%c2_51, %c0_52] : memref<66x128xf32, #tpu.memory_space<vmem>>, vector<16x128xf32>
    %94 = tpu.iota {dimensions = array<i32: 0>} : vector<16x128xi32>
    %c8_i32 = arith.constant 8 : i32
    %c0_i32_53 = arith.constant 0 : i32
    %95 = arith.cmpi eq, %c8_i32, %c0_i32_53 : i32
    %c1_i32_54 = arith.constant 1 : i32
    %96 = arith.select %95, %c1_i32_54, %c8_i32 : i32
    %97 = vector.broadcast %96 : i32 to vector<16x128xi32>
    %98 = arith.remsi %94, %97 : vector<16x128xi32>
    %c0_i32_55 = arith.constant 0 : i32
    %99 = vector.broadcast %c0_i32_55 : i32 to vector<16x128xi32>
    %100 = arith.cmpi ne, %98, %99 : vector<16x128xi32>
    %c0_i32_56 = arith.constant 0 : i32
    %101 = vector.broadcast %c0_i32_56 : i32 to vector<16x128xi32>
    %102 = arith.cmpi slt, %98, %101 : vector<16x128xi32>
    %c0_i32_57 = arith.constant 0 : i32
    %103 = arith.cmpi slt, %96, %c0_i32_57 : i32
    %104 = vector.broadcast %103 : i1 to vector<16x128xi1>
    %105 = vector.broadcast %104 : vector<16x128xi1> to vector<16x128xi1>
    %106 = arith.xori %102, %105 : vector<16x128xi1>
    %107 = arith.andi %106, %100 : vector<16x128xi1>
    %108 = vector.broadcast %96 : i32 to vector<16x128xi32>
    %109 = arith.addi %98, %108 : vector<16x128xi32>
    %110 = arith.select %107, %109, %98 : vector<16x128xi1>, vector<16x128xi32>
    %c0_i32_58 = arith.constant 0 : i32
    %111 = vector.broadcast %c0_i32_58 : i32 to vector<16x128xi32>
    %112 = arith.cmpi ne, %110, %111 : vector<16x128xi32>
    %cst_59 = arith.constant 0.000000e+00 : f32
    %113 = vector.broadcast %cst_59 : f32 to vector<16x128xf32>
    %114 = arith.select %112, %92, %113 : vector<16x128xi1>, vector<16x128xf32>
    %115 = arith.truncf %114 : vector<16x128xf32> to vector<16x128xbf16>
    %c8_i32_60 = arith.constant 8 : i32
    %c0_i32_61 = arith.constant 0 : i32
    %116 = arith.cmpi eq, %c8_i32_60, %c0_i32_61 : i32
    %c1_i32_62 = arith.constant 1 : i32
    %117 = arith.select %116, %c1_i32_62, %c8_i32_60 : i32
    %118 = vector.broadcast %117 : i32 to vector<16x128xi32>
    %119 = arith.remsi %94, %118 : vector<16x128xi32>
    %c0_i32_63 = arith.constant 0 : i32
    %120 = vector.broadcast %c0_i32_63 : i32 to vector<16x128xi32>
    %121 = arith.cmpi ne, %119, %120 : vector<16x128xi32>
    %c0_i32_64 = arith.constant 0 : i32
    %122 = vector.broadcast %c0_i32_64 : i32 to vector<16x128xi32>
    %123 = arith.cmpi slt, %119, %122 : vector<16x128xi32>
    %c0_i32_65 = arith.constant 0 : i32
    %124 = arith.cmpi slt, %117, %c0_i32_65 : i32
    %125 = vector.broadcast %124 : i1 to vector<16x128xi1>
    %126 = vector.broadcast %125 : vector<16x128xi1> to vector<16x128xi1>
    %127 = arith.xori %123, %126 : vector<16x128xi1>
    %128 = arith.andi %127, %121 : vector<16x128xi1>
    %129 = vector.broadcast %117 : i32 to vector<16x128xi32>
    %130 = arith.addi %119, %129 : vector<16x128xi32>
    %131 = arith.select %128, %130, %119 : vector<16x128xi1>, vector<16x128xi32>
    %c7_i32 = arith.constant 7 : i32
    %132 = vector.broadcast %c7_i32 : i32 to vector<16x128xi32>
    %133 = arith.cmpi ne, %131, %132 : vector<16x128xi32>
    %cst_66 = arith.constant 0.000000e+00 : f32
    %134 = vector.broadcast %cst_66 : f32 to vector<16x128xf32>
    %135 = arith.select %133, %93, %134 : vector<16x128xi1>, vector<16x128xf32>
    %136 = arith.truncf %135 : vector<16x128xf32> to vector<16x128xbf16>
    %c1_67 = arith.constant 1 : index
    %c0_68 = arith.constant 0 : index
    %c0_69 = arith.constant 0 : index
    %137 = vector.load %arg16[%c1_67, %c0_68, %c0_69] : memref<3x128x128xbf16, #tpu.memory_space<vmem>>, vector<1x128x128xbf16>
    %138 = vector.shape_cast %137 : vector<1x128x128xbf16> to vector<128x128xbf16>
    %cst_70 = arith.constant dense<0.000000e+00> : vector<16x128xf32>
    %139 = tpu.matmul %90, %138, %cst_70 {dimension_numbers = #tpu.dot_dimension_numbers<[1], [0], [0], [1], [0, 0, 1, 1], [], []>} : vector<16x128xbf16>, vector<128x128xbf16>, vector<16x128xf32> -> vector<16x128xf32>
    %c0_71 = arith.constant 0 : index
    %c0_72 = arith.constant 0 : index
    %c0_73 = arith.constant 0 : index
    %140 = vector.load %arg16[%c0_71, %c0_72, %c0_73] : memref<3x128x128xbf16, #tpu.memory_space<vmem>>, vector<1x128x128xbf16>
    %141 = vector.shape_cast %140 : vector<1x128x128xbf16> to vector<128x128xbf16>
    %cst_74 = arith.constant dense<0.000000e+00> : vector<16x128xf32>
    %142 = tpu.matmul %115, %141, %cst_74 {dimension_numbers = #tpu.dot_dimension_numbers<[1], [0], [0], [1], [0, 0, 1, 1], [], []>} : vector<16x128xbf16>, vector<128x128xbf16>, vector<16x128xf32> -> vector<16x128xf32>
    %143 = arith.addf %139, %142 : vector<16x128xf32>
    %c2_75 = arith.constant 2 : index
    %c0_76 = arith.constant 0 : index
    %c0_77 = arith.constant 0 : index
    %144 = vector.load %arg16[%c2_75, %c0_76, %c0_77] : memref<3x128x128xbf16, #tpu.memory_space<vmem>>, vector<1x128x128xbf16>
    %145 = vector.shape_cast %144 : vector<1x128x128xbf16> to vector<128x128xbf16>
    %cst_78 = arith.constant dense<0.000000e+00> : vector<16x128xf32>
    %146 = tpu.matmul %136, %145, %cst_78 {dimension_numbers = #tpu.dot_dimension_numbers<[1], [0], [0], [1], [0, 0, 1, 1], [], []>} : vector<16x128xbf16>, vector<128x128xbf16>, vector<16x128xf32> -> vector<16x128xf32>
    %147 = arith.addf %143, %146 : vector<16x128xf32>
    %c0_79 = arith.constant 0 : index
    %c0_80 = arith.constant 0 : index
    %148 = vector.load %arg17[%c0_79, %c0_80] : memref<1x128xf32, #tpu.memory_space<vmem>>, vector<1x128xf32>
    %149 = vector.broadcast %148 : vector<1x128xf32> to vector<16x128xf32>
    %150 = arith.addf %147, %149 : vector<16x128xf32>
    %c0_81 = arith.constant 0 : index
    %c0_82 = arith.constant 0 : index
    %151 = vector.load %arg22[%c0_81, %c0_82] : memref<16x128xf32, #tpu.memory_space<vmem>>, vector<16x128xf32>
    tpu.vector_store %arg22[%c0_81, %c0_82], %150 {strides = array<i32>} : memref<16x128xf32, #tpu.memory_space<vmem>>, vector<16x128xf32>,
    %c0_83 = arith.constant 0 : index
    %c0_84 = arith.constant 0 : index
    %152 = vector.load %arg1[%c0_83, %c0_84] : memref<32x16xbf16, #tpu.memory_space<vmem>>, vector<32x16xbf16>
    %c0_85 = arith.constant 0 : index
    %c0_86 = arith.constant 0 : index
    %153 = vector.load %arg6[%c0_85, %c0_86] : memref<16x128xbf16, #tpu.memory_space<vmem>>, vector<16x128xbf16>
    %cst_87 = arith.constant dense<0.000000e+00> : vector<32x128xf32>
    %154 = tpu.matmul %152, %153, %cst_87 {dimension_numbers = #tpu.dot_dimension_numbers<[1], [0], [0], [1], [0, 0, 1, 1], [], []>} : vector<32x16xbf16>, vector<16x128xbf16>, vector<32x128xf32> -> vector<32x128xf32>
    %c0_88 = arith.constant 0 : index
    %c0_89 = arith.constant 0 : index
    %155 = vector.load %arg7[%c0_88, %c0_89] : memref<1x128xf32, #tpu.memory_space<vmem>>, vector<1x128xf32>
    %156 = vector.broadcast %155 : vector<1x128xf32> to vector<32x128xf32>
    %157 = arith.addf %154, %156 : vector<32x128xf32>
    %158 = tpu.iota {dimensions = array<i32: 0>} : vector<32x16xi32>
    %159 = tpu.iota {dimensions = array<i32: 1>} : vector<32x16xi32>
    %c2_i32_90 = arith.constant 2 : i32
    %160 = vector.broadcast %c2_i32_90 : i32 to vector<32x16xi32>
    %161 = arith.muli %160, %159 : vector<32x16xi32>
    %162 = arith.subi %158, %161 : vector<32x16xi32>
    %c0_i32_91 = arith.constant 0 : i32
    %163 = vector.broadcast %c0_i32_91 : i32 to vector<32x16xi32>
    %164 = arith.cmpi eq, %162, %163 : vector<32x16xi32>
    %c1_i32_92 = arith.constant 1 : i32
    %165 = vector.broadcast %c1_i32_92 : i32 to vector<32x16xi32>
    %166 = arith.cmpi eq, %162, %165 : vector<32x16xi32>
    %167 = arith.ori %164, %166 : vector<32x16xi1>
    %168 = arith.extui %167 : vector<32x16xi1> to vector<32x16xi32>
    %169 = arith.sitofp %168 : vector<32x16xi32> to vector<32x16xf32>
    %170 = arith.truncf %169 : vector<32x16xf32> to vector<32x16xbf16>
    %171 = arith.truncf %89 : vector<16x128xf32> to vector<16x128xbf16>
    %cst_93 = arith.constant dense<0.000000e+00> : vector<32x128xf32>
    %172 = tpu.matmul %170, %171, %cst_93 {dimension_numbers = #tpu.dot_dimension_numbers<[1], [0], [0], [1], [0, 0, 1, 1], [], []>} : vector<32x16xbf16>, vector<16x128xbf16>, vector<32x128xf32> -> vector<32x128xf32>
    %173 = arith.addf %157, %172 : vector<32x128xf32>
    %174 = arith.truncf %173 : vector<32x128xf32> to vector<32x128xbf16>
    %c1_94 = arith.constant 1 : index
    %c0_95 = arith.constant 0 : index
    %175 = vector.load %arg24[%c1_94, %c0_95] : memref<66x128xf32, #tpu.memory_space<vmem>>, vector<32x128xf32>
    tpu.vector_store %arg24[%c1_94, %c0_95], %173 {strides = array<i32>} : memref<66x128xf32, #tpu.memory_space<vmem>>, vector<32x128xf32>,
    %c0_96 = arith.constant 0 : index
    %c0_97 = arith.constant 0 : index
    %176 = vector.load %arg24[%c0_96, %c0_97] : memref<66x128xf32, #tpu.memory_space<vmem>>, vector<32x128xf32>
    %c2_98 = arith.constant 2 : index
    %c0_99 = arith.constant 0 : index
    %177 = vector.load %arg24[%c2_98, %c0_99] : memref<66x128xf32, #tpu.memory_space<vmem>>, vector<32x128xf32>
    %178 = tpu.iota {dimensions = array<i32: 0>} : vector<32x128xi32>
    %c16_i32 = arith.constant 16 : i32
    %c0_i32_100 = arith.constant 0 : i32
    %179 = arith.cmpi eq, %c16_i32, %c0_i32_100 : i32
    %c1_i32_101 = arith.constant 1 : i32
    %180 = arith.select %179, %c1_i32_101, %c16_i32 : i32
    %181 = vector.broadcast %180 : i32 to vector<32x128xi32>
    %182 = arith.remsi %178, %181 : vector<32x128xi32>
    %c0_i32_102 = arith.constant 0 : i32
    %183 = vector.broadcast %c0_i32_102 : i32 to vector<32x128xi32>
    %184 = arith.cmpi ne, %182, %183 : vector<32x128xi32>
    %c0_i32_103 = arith.constant 0 : i32
    %185 = vector.broadcast %c0_i32_103 : i32 to vector<32x128xi32>
    %186 = arith.cmpi slt, %182, %185 : vector<32x128xi32>
    %c0_i32_104 = arith.constant 0 : i32
    %187 = arith.cmpi slt, %180, %c0_i32_104 : i32
    %188 = vector.broadcast %187 : i1 to vector<32x128xi1>
    %189 = vector.broadcast %188 : vector<32x128xi1> to vector<32x128xi1>
    %190 = arith.xori %186, %189 : vector<32x128xi1>
    %191 = arith.andi %190, %184 : vector<32x128xi1>
    %192 = vector.broadcast %180 : i32 to vector<32x128xi32>
    %193 = arith.addi %182, %192 : vector<32x128xi32>
    %194 = arith.select %191, %193, %182 : vector<32x128xi1>, vector<32x128xi32>
    %c0_i32_105 = arith.constant 0 : i32
    %195 = vector.broadcast %c0_i32_105 : i32 to vector<32x128xi32>
    %196 = arith.cmpi ne, %194, %195 : vector<32x128xi32>
    %cst_106 = arith.constant 0.000000e+00 : f32
    %197 = vector.broadcast %cst_106 : f32 to vector<32x128xf32>
    %198 = arith.select %196, %176, %197 : vector<32x128xi1>, vector<32x128xf32>
    %199 = arith.truncf %198 : vector<32x128xf32> to vector<32x128xbf16>
    %c16_i32_107 = arith.constant 16 : i32
    %c0_i32_108 = arith.constant 0 : i32
    %200 = arith.cmpi eq, %c16_i32_107, %c0_i32_108 : i32
    %c1_i32_109 = arith.constant 1 : i32
    %201 = arith.select %200, %c1_i32_109, %c16_i32_107 : i32
    %202 = vector.broadcast %201 : i32 to vector<32x128xi32>
    %203 = arith.remsi %178, %202 : vector<32x128xi32>
    %c0_i32_110 = arith.constant 0 : i32
    %204 = vector.broadcast %c0_i32_110 : i32 to vector<32x128xi32>
    %205 = arith.cmpi ne, %203, %204 : vector<32x128xi32>
    %c0_i32_111 = arith.constant 0 : i32
    %206 = vector.broadcast %c0_i32_111 : i32 to vector<32x128xi32>
    %207 = arith.cmpi slt, %203, %206 : vector<32x128xi32>
    %c0_i32_112 = arith.constant 0 : i32
    %208 = arith.cmpi slt, %201, %c0_i32_112 : i32
    %209 = vector.broadcast %208 : i1 to vector<32x128xi1>
    %210 = vector.broadcast %209 : vector<32x128xi1> to vector<32x128xi1>
    %211 = arith.xori %207, %210 : vector<32x128xi1>
    %212 = arith.andi %211, %205 : vector<32x128xi1>
    %213 = vector.broadcast %201 : i32 to vector<32x128xi32>
    %214 = arith.addi %203, %213 : vector<32x128xi32>
    %215 = arith.select %212, %214, %203 : vector<32x128xi1>, vector<32x128xi32>
    %c15_i32 = arith.constant 15 : i32
    %216 = vector.broadcast %c15_i32 : i32 to vector<32x128xi32>
    %217 = arith.cmpi ne, %215, %216 : vector<32x128xi32>
    %cst_113 = arith.constant 0.000000e+00 : f32
    %218 = vector.broadcast %cst_113 : f32 to vector<32x128xf32>
    %219 = arith.select %217, %177, %218 : vector<32x128xi1>, vector<32x128xf32>
    %220 = arith.truncf %219 : vector<32x128xf32> to vector<32x128xbf16>
    %c1_114 = arith.constant 1 : index
    %c0_115 = arith.constant 0 : index
    %c0_116 = arith.constant 0 : index
    %221 = vector.load %arg14[%c1_114, %c0_115, %c0_116] : memref<3x128x128xbf16, #tpu.memory_space<vmem>>, vector<1x128x128xbf16>
    %222 = vector.shape_cast %221 : vector<1x128x128xbf16> to vector<128x128xbf16>
    %cst_117 = arith.constant dense<0.000000e+00> : vector<32x128xf32>
    %223 = tpu.matmul %174, %222, %cst_117 {dimension_numbers = #tpu.dot_dimension_numbers<[1], [0], [0], [1], [0, 0, 1, 1], [], []>} : vector<32x128xbf16>, vector<128x128xbf16>, vector<32x128xf32> -> vector<32x128xf32>
    %c0_118 = arith.constant 0 : index
    %c0_119 = arith.constant 0 : index
    %c0_120 = arith.constant 0 : index
    %224 = vector.load %arg14[%c0_118, %c0_119, %c0_120] : memref<3x128x128xbf16, #tpu.memory_space<vmem>>, vector<1x128x128xbf16>
    %225 = vector.shape_cast %224 : vector<1x128x128xbf16> to vector<128x128xbf16>
    %cst_121 = arith.constant dense<0.000000e+00> : vector<32x128xf32>
    %226 = tpu.matmul %199, %225, %cst_121 {dimension_numbers = #tpu.dot_dimension_numbers<[1], [0], [0], [1], [0, 0, 1, 1], [], []>} : vector<32x128xbf16>, vector<128x128xbf16>, vector<32x128xf32> -> vector<32x128xf32>
    %227 = arith.addf %223, %226 : vector<32x128xf32>
    %c2_122 = arith.constant 2 : index
    %c0_123 = arith.constant 0 : index
    %c0_124 = arith.constant 0 : index
    %228 = vector.load %arg14[%c2_122, %c0_123, %c0_124] : memref<3x128x128xbf16, #tpu.memory_space<vmem>>, vector<1x128x128xbf16>
    %229 = vector.shape_cast %228 : vector<1x128x128xbf16> to vector<128x128xbf16>
    %cst_125 = arith.constant dense<0.000000e+00> : vector<32x128xf32>
    %230 = tpu.matmul %220, %229, %cst_125 {dimension_numbers = #tpu.dot_dimension_numbers<[1], [0], [0], [1], [0, 0, 1, 1], [], []>} : vector<32x128xbf16>, vector<128x128xbf16>, vector<32x128xf32> -> vector<32x128xf32>
    %231 = arith.addf %227, %230 : vector<32x128xf32>
    %c0_126 = arith.constant 0 : index
    %c0_127 = arith.constant 0 : index
    %232 = vector.load %arg15[%c0_126, %c0_127] : memref<1x128xf32, #tpu.memory_space<vmem>>, vector<1x128xf32>
    %233 = vector.broadcast %232 : vector<1x128xf32> to vector<32x128xf32>
    %234 = arith.addf %231, %233 : vector<32x128xf32>
    %c0_128 = arith.constant 0 : index
    %c0_129 = arith.constant 0 : index
    %235 = vector.load %arg21[%c0_128, %c0_129] : memref<32x128xf32, #tpu.memory_space<vmem>>, vector<32x128xf32>
    tpu.vector_store %arg21[%c0_128, %c0_129], %234 {strides = array<i32>} : memref<32x128xf32, #tpu.memory_space<vmem>>, vector<32x128xf32>,
    %c0_130 = arith.constant 0 : index
    %c0_131 = arith.constant 0 : index
    %236 = vector.load %arg0[%c0_130, %c0_131] : memref<64x8xbf16, #tpu.memory_space<vmem>>, vector<64x8xbf16>
    %c0_132 = arith.constant 0 : index
    %c0_133 = arith.constant 0 : index
    %237 = vector.load %arg4[%c0_132, %c0_133] : memref<8x128xbf16, #tpu.memory_space<vmem>>, vector<8x128xbf16>
    %cst_134 = arith.constant dense<0.000000e+00> : vector<64x128xf32>
    %238 = tpu.matmul %236, %237, %cst_134 {dimension_numbers = #tpu.dot_dimension_numbers<[1], [0], [0], [1], [0, 0, 1, 1], [], []>} : vector<64x8xbf16>, vector<8x128xbf16>, vector<64x128xf32> -> vector<64x128xf32>
    %c0_135 = arith.constant 0 : index
    %c0_136 = arith.constant 0 : index
    %239 = vector.load %arg5[%c0_135, %c0_136] : memref<1x128xf32, #tpu.memory_space<vmem>>, vector<1x128xf32>
    %240 = vector.broadcast %239 : vector<1x128xf32> to vector<64x128xf32>
    %241 = arith.addf %238, %240 : vector<64x128xf32>
    %242 = tpu.iota {dimensions = array<i32: 0>} : vector<64x32xi32>
    %243 = tpu.iota {dimensions = array<i32: 1>} : vector<64x32xi32>
    %c2_i32_137 = arith.constant 2 : i32
    %244 = vector.broadcast %c2_i32_137 : i32 to vector<64x32xi32>
    %245 = arith.muli %244, %243 : vector<64x32xi32>
    %246 = arith.subi %242, %245 : vector<64x32xi32>
    %c0_i32_138 = arith.constant 0 : i32
    %247 = vector.broadcast %c0_i32_138 : i32 to vector<64x32xi32>
    %248 = arith.cmpi eq, %246, %247 : vector<64x32xi32>
    %c1_i32_139 = arith.constant 1 : i32
    %249 = vector.broadcast %c1_i32_139 : i32 to vector<64x32xi32>
    %250 = arith.cmpi eq, %246, %249 : vector<64x32xi32>
    %251 = arith.ori %248, %250 : vector<64x32xi1>
    %252 = arith.extui %251 : vector<64x32xi1> to vector<64x32xi32>
    %253 = arith.sitofp %252 : vector<64x32xi32> to vector<64x32xf32>
    %254 = arith.truncf %253 : vector<64x32xf32> to vector<64x32xbf16>
    %255 = arith.truncf %173 : vector<32x128xf32> to vector<32x128xbf16>
    %cst_140 = arith.constant dense<0.000000e+00> : vector<64x128xf32>
    %256 = tpu.matmul %254, %255, %cst_140 {dimension_numbers = #tpu.dot_dimension_numbers<[1], [0], [0], [1], [0, 0, 1, 1], [], []>} : vector<64x32xbf16>, vector<32x128xbf16>, vector<64x128xf32> -> vector<64x128xf32>
    %257 = arith.addf %241, %256 : vector<64x128xf32>
    %258 = arith.truncf %257 : vector<64x128xf32> to vector<64x128xbf16>
    %c1_141 = arith.constant 1 : index
    %c0_142 = arith.constant 0 : index
    %259 = vector.load %arg24[%c1_141, %c0_142] : memref<66x128xf32, #tpu.memory_space<vmem>>, vector<64x128xf32>
    tpu.vector_store %arg24[%c1_141, %c0_142], %257 {strides = array<i32>} : memref<66x128xf32, #tpu.memory_space<vmem>>, vector<64x128xf32>,
    %c0_143 = arith.constant 0 : index
    %c0_144 = arith.constant 0 : index
    %260 = vector.load %arg24[%c0_143, %c0_144] : memref<66x128xf32, #tpu.memory_space<vmem>>, vector<64x128xf32>
    %c2_145 = arith.constant 2 : index
    %c0_146 = arith.constant 0 : index
    %261 = vector.load %arg24[%c2_145, %c0_146] : memref<66x128xf32, #tpu.memory_space<vmem>>, vector<64x128xf32>
    %262 = tpu.iota {dimensions = array<i32: 0>} : vector<64x128xi32>
    %c32_i32 = arith.constant 32 : i32
    %c0_i32_147 = arith.constant 0 : i32
    %263 = arith.cmpi eq, %c32_i32, %c0_i32_147 : i32
    %c1_i32_148 = arith.constant 1 : i32
    %264 = arith.select %263, %c1_i32_148, %c32_i32 : i32
    %265 = vector.broadcast %264 : i32 to vector<64x128xi32>
    %266 = arith.remsi %262, %265 : vector<64x128xi32>
    %c0_i32_149 = arith.constant 0 : i32
    %267 = vector.broadcast %c0_i32_149 : i32 to vector<64x128xi32>
    %268 = arith.cmpi ne, %266, %267 : vector<64x128xi32>
    %c0_i32_150 = arith.constant 0 : i32
    %269 = vector.broadcast %c0_i32_150 : i32 to vector<64x128xi32>
    %270 = arith.cmpi slt, %266, %269 : vector<64x128xi32>
    %c0_i32_151 = arith.constant 0 : i32
    %271 = arith.cmpi slt, %264, %c0_i32_151 : i32
    %272 = vector.broadcast %271 : i1 to vector<64x128xi1>
    %273 = vector.broadcast %272 : vector<64x128xi1> to vector<64x128xi1>
    %274 = arith.xori %270, %273 : vector<64x128xi1>
    %275 = arith.andi %274, %268 : vector<64x128xi1>
    %276 = vector.broadcast %264 : i32 to vector<64x128xi32>
    %277 = arith.addi %266, %276 : vector<64x128xi32>
    %278 = arith.select %275, %277, %266 : vector<64x128xi1>, vector<64x128xi32>
    %c0_i32_152 = arith.constant 0 : i32
    %279 = vector.broadcast %c0_i32_152 : i32 to vector<64x128xi32>
    %280 = arith.cmpi ne, %278, %279 : vector<64x128xi32>
    %cst_153 = arith.constant 0.000000e+00 : f32
    %281 = vector.broadcast %cst_153 : f32 to vector<64x128xf32>
    %282 = arith.select %280, %260, %281 : vector<64x128xi1>, vector<64x128xf32>
    %283 = arith.truncf %282 : vector<64x128xf32> to vector<64x128xbf16>
    %c32_i32_154 = arith.constant 32 : i32
    %c0_i32_155 = arith.constant 0 : i32
    %284 = arith.cmpi eq, %c32_i32_154, %c0_i32_155 : i32
    %c1_i32_156 = arith.constant 1 : i32
    %285 = arith.select %284, %c1_i32_156, %c32_i32_154 : i32
    %286 = vector.broadcast %285 : i32 to vector<64x128xi32>
    %287 = arith.remsi %262, %286 : vector<64x128xi32>
    %c0_i32_157 = arith.constant 0 : i32
    %288 = vector.broadcast %c0_i32_157 : i32 to vector<64x128xi32>
    %289 = arith.cmpi ne, %287, %288 : vector<64x128xi32>
    %c0_i32_158 = arith.constant 0 : i32
    %290 = vector.broadcast %c0_i32_158 : i32 to vector<64x128xi32>
    %291 = arith.cmpi slt, %287, %290 : vector<64x128xi32>
    %c0_i32_159 = arith.constant 0 : i32
    %292 = arith.cmpi slt, %285, %c0_i32_159 : i32
    %293 = vector.broadcast %292 : i1 to vector<64x128xi1>
    %294 = vector.broadcast %293 : vector<64x128xi1> to vector<64x128xi1>
    %295 = arith.xori %291, %294 : vector<64x128xi1>
    %296 = arith.andi %295, %289 : vector<64x128xi1>
    %297 = vector.broadcast %285 : i32 to vector<64x128xi32>
    %298 = arith.addi %287, %297 : vector<64x128xi32>
    %299 = arith.select %296, %298, %287 : vector<64x128xi1>, vector<64x128xi32>
    %c31_i32 = arith.constant 31 : i32
    %300 = vector.broadcast %c31_i32 : i32 to vector<64x128xi32>
    %301 = arith.cmpi ne, %299, %300 : vector<64x128xi32>
    %cst_160 = arith.constant 0.000000e+00 : f32
    %302 = vector.broadcast %cst_160 : f32 to vector<64x128xf32>
    %303 = arith.select %301, %261, %302 : vector<64x128xi1>, vector<64x128xf32>
    %304 = arith.truncf %303 : vector<64x128xf32> to vector<64x128xbf16>
    %c1_161 = arith.constant 1 : index
    %c0_162 = arith.constant 0 : index
    %c0_163 = arith.constant 0 : index
    %305 = vector.load %arg12[%c1_161, %c0_162, %c0_163] : memref<3x128x128xbf16, #tpu.memory_space<vmem>>, vector<1x128x128xbf16>
    %306 = vector.shape_cast %305 : vector<1x128x128xbf16> to vector<128x128xbf16>
    %cst_164 = arith.constant dense<0.000000e+00> : vector<64x128xf32>
    %307 = tpu.matmul %258, %306, %cst_164 {dimension_numbers = #tpu.dot_dimension_numbers<[1], [0], [0], [1], [0, 0, 1, 1], [], []>} : vector<64x128xbf16>, vector<128x128xbf16>, vector<64x128xf32> -> vector<64x128xf32>
    %c0_165 = arith.constant 0 : index
    %c0_166 = arith.constant 0 : index
    %c0_167 = arith.constant 0 : index
    %308 = vector.load %arg12[%c0_165, %c0_166, %c0_167] : memref<3x128x128xbf16, #tpu.memory_space<vmem>>, vector<1x128x128xbf16>
    %309 = vector.shape_cast %308 : vector<1x128x128xbf16> to vector<128x128xbf16>
    %cst_168 = arith.constant dense<0.000000e+00> : vector<64x128xf32>
    %310 = tpu.matmul %283, %309, %cst_168 {dimension_numbers = #tpu.dot_dimension_numbers<[1], [0], [0], [1], [0, 0, 1, 1], [], []>} : vector<64x128xbf16>, vector<128x128xbf16>, vector<64x128xf32> -> vector<64x128xf32>
    %311 = arith.addf %307, %310 : vector<64x128xf32>
    %c2_169 = arith.constant 2 : index
    %c0_170 = arith.constant 0 : index
    %c0_171 = arith.constant 0 : index
    %312 = vector.load %arg12[%c2_169, %c0_170, %c0_171] : memref<3x128x128xbf16, #tpu.memory_space<vmem>>, vector<1x128x128xbf16>
    %313 = vector.shape_cast %312 : vector<1x128x128xbf16> to vector<128x128xbf16>
    %cst_172 = arith.constant dense<0.000000e+00> : vector<64x128xf32>
    %314 = tpu.matmul %304, %313, %cst_172 {dimension_numbers = #tpu.dot_dimension_numbers<[1], [0], [0], [1], [0, 0, 1, 1], [], []>} : vector<64x128xbf16>, vector<128x128xbf16>, vector<64x128xf32> -> vector<64x128xf32>
    %315 = arith.addf %311, %314 : vector<64x128xf32>
    %c0_173 = arith.constant 0 : index
    %c0_174 = arith.constant 0 : index
    %316 = vector.load %arg13[%c0_173, %c0_174] : memref<1x128xf32, #tpu.memory_space<vmem>>, vector<1x128xf32>
    %317 = vector.broadcast %316 : vector<1x128xf32> to vector<64x128xf32>
    %318 = arith.addf %315, %317 : vector<64x128xf32>
    %c0_175 = arith.constant 0 : index
    %c0_176 = arith.constant 0 : index
    %319 = vector.load %arg20[%c0_175, %c0_176] : memref<64x128xf32, #tpu.memory_space<vmem>>, vector<64x128xf32>
    tpu.vector_store %arg20[%c0_175, %c0_176], %318 {strides = array<i32>} : memref<64x128xf32, #tpu.memory_space<vmem>>, vector<64x128xf32>,
    return
  }
}

</mosaic_0001>

<bundles_post_ra>
// kernel: tpu_custom_call.1
= control target key start
LH: loop header
LB: loop body
LE: loop exit
PB: predicated region body
PF: predicated region fallthrough
CT: control target
= control target key end

     0   :  { %s4104_s0 = inlined_call_operand.vmem [shape: bf16[64,8], index: 0, kind: input, shape index: {}]   ;;  %s4105_s1 = inlined_call_operand.vmem [shape: bf16[32,16], index: 1, kind: input, shape index: {}]   ;;  %s4106_s2 = inlined_call_operand.vmem [shape: bf16[16,32], index: 2, kind: input, shape index: {}]   ;;  %s4107_s3 = inlined_call_operand.vmem [shape: bf16[8,64], index: 3, kind: input, shape index: {}]   ;;  %s4108_s4 = inlined_call_operand.vmem [shape: bf16[8,128], index: 4, kind: input, shape index: {}]   ;;  %s4109_s5 = inlined_call_operand.vmem [shape: f32[1,128], index: 5, kind: input, shape index: {}]   ;;  %s4110_s6 = inlined_call_operand.vmem [shape: bf16[16,128], index: 6, kind: input, shape index: {}]   ;;  %s4111_s7 = inlined_call_operand.vmem [shape: f32[1,128], index: 7, kind: input, shape index: {}]   ;;  %s4112_s8 = inlined_call_operand.vmem [shape: bf16[32,128], index: 8, kind: input, shape index: {}]   ;;  %s4113_s9 = inlined_call_operand.vmem [shape: f32[1,128], index: 9, kind: input, shape index: {}]   ;;  %s4114_s10 = inlined_call_operand.vmem [shape: bf16[64,128], index: 10, kind: input, shape index: {}]   ;;  %s4115_s11 = inlined_call_operand.vmem [shape: f32[1,128], index: 11, kind: input, shape index: {}]   ;;  %s4116_s12 = inlined_call_operand.hbm [shape: bf16[3,128,128], index: 12, kind: input, shape index: {}]   ;;  %s4117_s13 = inlined_call_operand.vmem [shape: f32[1,128], index: 13, kind: input, shape index: {}]   ;;  %s4118_s14 = inlined_call_operand.hbm [shape: bf16[3,128,128], index: 14, kind: input, shape index: {}]   ;;  %s4119_s15 = inlined_call_operand.vmem [shape: f32[1,128], index: 15, kind: input, shape index: {}]   ;;  %s4120_s16 = inlined_call_operand.hbm [shape: bf16[3,128,128], index: 16, kind: input, shape index: {}]   ;;  %s4121_s17 = inlined_call_operand.vmem [shape: f32[1,128], index: 17, kind: input, shape index: {}]   ;;  %s4122_s18 = inlined_call_operand.hbm [shape: bf16[3,128,128], index: 18, kind: input, shape index: {}]   ;;  %s4123_s19 = inlined_call_operand.vmem [shape: f32[1,128], index: 19, kind: input, shape index: {}]   ;;  %s4124_s20 = inlined_call_operand.hbm [shape: f32[64,128], index: 20, kind: output, shape index: {0}]   ;;  %s4125_s21 = inlined_call_operand.hbm [shape: f32[32,128], index: 21, kind: output, shape index: {1}]   ;;  %s4126_s22 = inlined_call_operand.hbm [shape: f32[16,128], index: 22, kind: output, shape index: {2}]   ;;  %s4127_s23 = inlined_call_operand.hbm [shape: f32[8,128], index: 23, kind: output, shape index: {3}]  }
   0x1   :  { %4130 = sst [smem:[#allocation23_spill]] %s4104_s0 }
   0x2   :  { %4131 = sst [smem:[#allocation24_spill]] %s4105_s1 }
   0x3   :  { %4132 = sst [smem:[#allocation25_spill]] %s4106_s2 }
   0x4   :  { %4133 = sst [smem:[#allocation26_spill]] %s4107_s3 }
   0x5   :  { %4134 = sst [smem:[#allocation27_spill]] %s4108_s4 }
   0x6   :  { %4135 = sst [smem:[#allocation28_spill]] %s4109_s5 }
   0x7   :  { %4136 = sst [smem:[#allocation29_spill]] %s4110_s6 }
   0x8   :  { %4137 = sst [smem:[#allocation30_spill]] %s4111_s7 }
   0x9   :  { %29 = vsyncpa [#allocation4], 0 }
   0xa   :  { %30 = vsyncpa [#allocation7], 0 }
   0xb   :  { %31 = vsyncpa [#allocation10], 0 }
   0xc   :  { %32 = vsyncpa [#allocation5], 0 }
   0xd   :  { %33 = vsyncpa [#allocation13], 0 }
   0xe   :  { %34 = vsyncpa [#allocation16], 0  ;;  %s3553_s4 = smov [#allocation6]   ;;  %s3554_s24 = smov [#allocation3]  }
   0xf   :  { %s78_s30 = sshll.u32 %s3553_s4, 4  ;;  %s64_s25 = sshll.u32 %s3554_s24, 4  ;;  %s79_s30 = int_to_ptr.vmem [resolvable:$true] %s78_s30  ;;  %s3688_s25 = int_to_ptr.vmem [resolvable:$true] %s64_s25 }
  0x10   :  { %s3365_s26 = scalar_lea.hbm %s4118_s14, 3072 }
  0x11   :  { %p3366_p0 = scmp.ne.s32.totalorder %s4118_s14, %s3365_s26  ;;  %p3369_p1 = scmp.lt.u32.totalorder %s3365_s26, %s4118_s14 }
  0x13   :  { %p3371_p2 = pnand %p3369_p1, %p3366_p0 }
  0x15   :  { %3374 = shalt.err (!%p3371_p2)
}
  0x16   :  { %s3375_s28 = scalar_lea.vmem %s79_s30, 3072  ;;  %p3380_p4 = scmp.lt.s32.totalorder %s79_s30, %s79_s30 }
  0x17   :  { %p3376_p3 = scmp.ne.s32.totalorder %s79_s30, %s3375_s28  ;;  %p3381_p5 = scmp.lt.s32.totalorder %s3375_s28, %s3375_s28 }
  0x19   :  { %p3382_p6 = por %p3381_p5, %p3380_p4 }
  0x1b   :  { %p3383_p7 = pnand %p3382_p6, %p3376_p3 }
  0x1d   :  { %3386 = shalt.err (!%p3383_p7)
}
  0x1e   :  { %s3555_s29 = smov 64   ;;  %s3556_s3 = smov 4  }
  0x1f   :  { %84 = dma.hbm_to_vmem [thread:$0]  %s4118_s14, 3072, %s79_s30, [#allocation7], %s3555_s29, %s3555_s29, %s3556_s3  }
  0x20   :  { %s3387_s1 = scalar_lea.hbm %s4116_s12, 3072 }
  0x21   :  { %p3388_p8 = scmp.ne.s32.totalorder %s4116_s12, %s3387_s1  ;;  %p3391_p9 = scmp.lt.u32.totalorder %s3387_s1, %s4116_s12 }
  0x23   :  { %p3393_p10 = pnand %p3391_p9, %p3388_p8 }
  0x25   :  { %3396 = shalt.err (!%p3393_p10)
}
  0x26   :  { %s3397_s7 = scalar_lea.vmem %s3688_s25, 3072  ;;  %p3402_p12 = scmp.lt.s32.totalorder %s3688_s25, %s3688_s25 }
  0x27   :  { %p3398_p11 = scmp.ne.s32.totalorder %s3688_s25, %s3397_s7  ;;  %p3403_p13 = scmp.lt.s32.totalorder %s3397_s7, %s3397_s7 }
  0x29   :  { %p3404_p0 = por %p3403_p13, %p3402_p12 }
  0x2b   :  { %p3405_p1 = pnand %p3404_p0, %p3398_p11 }
  0x2d   :  { %3408 = shalt.err (!%p3405_p1)
}
  0x2e   :  { %70 = dma.hbm_to_vmem [thread:$0]  %s4116_s12, 3072, %s3688_s25, [#allocation4], %s3555_s29, %s3555_s29, %s3556_s3  }
  0x2f   :  { %s3557_s28 = smov [#allocation8]   ;;  %s3558_s4 = smov [#allocation9]  }
  0x30   :  { %s92_s0 = sshll.u32 %s3557_s28, 4  ;;  %s106_s24 = sshll.u32 %s3558_s4, 4  ;;  %s93_s0 = int_to_ptr.vmem [resolvable:$true] %s92_s0  ;;  %s3725_s24 = int_to_ptr.vmem [resolvable:$true] %s106_s24 }
  0x31   :  { %s3409_s26 = scalar_lea.hbm %s4120_s16, 3072 }
  0x32   :  { %p3410_p2 = scmp.ne.s32.totalorder %s4120_s16, %s3409_s26  ;;  %p3413_p3 = scmp.lt.u32.totalorder %s3409_s26, %s4120_s16 }
  0x34   :  { %p3415_p4 = pnand %p3413_p3, %p3410_p2 }
  0x36   :  { %3418 = shalt.err (!%p3415_p4)
}
  0x37   :  { %s3419_s12 = scalar_lea.vmem %s93_s0, 3072  ;;  %p3424_p6 = scmp.lt.s32.totalorder %s93_s0, %s93_s0 }
  0x38   :  { %p3420_p5 = scmp.ne.s32.totalorder %s93_s0, %s3419_s12  ;;  %p3425_p7 = scmp.lt.s32.totalorder %s3419_s12, %s3419_s12 }
  0x3a   :  { %p3426_p8 = por %p3425_p7, %p3424_p6 }
  0x3c   :  { %p3427_p9 = pnand %p3426_p8, %p3420_p5 }
  0x3e   :  { %3430 = shalt.err (!%p3427_p9)
}
  0x3f   :  { %98 = dma.hbm_to_vmem [thread:$0]  %s4120_s16, 3072, %s93_s0, [#allocation7], %s3555_s29, %s3555_s29, %s3556_s3  }
  0x40   :  { %s3431_s4 = scalar_lea.hbm %s4122_s18, 3072 }
  0x41   :  { %p3432_p10 = scmp.ne.s32.totalorder %s4122_s18, %s3431_s4  ;;  %p3435_p11 = scmp.lt.u32.totalorder %s3431_s4, %s4122_s18 }
  0x43   :  { %p3437_p12 = pnand %p3435_p11, %p3432_p10 }
  0x45   :  { %3440 = shalt.err (!%p3437_p12)
}
  0x46   :  { %s3441_s6 = scalar_lea.vmem %s3725_s24, 3072  ;;  %p3446_p0 = scmp.lt.s32.totalorder %s3725_s24, %s3725_s24 }
  0x47   :  { %p3442_p13 = scmp.ne.s32.totalorder %s3725_s24, %s3441_s6  ;;  %p3447_p1 = scmp.lt.s32.totalorder %s3441_s6, %s3441_s6 }
  0x49   :  { %p3448_p2 = por %p3447_p1, %p3446_p0 }
  0x4b   :  { %p3449_p3 = pnand %p3448_p2, %p3442_p13 }
  0x4d   :  { %3452 = shalt.err (!%p3449_p3)
}
  0x4e   :  { %112 = dma.hbm_to_vmem [thread:$0]  %s4122_s18, 3072, %s3725_s24, [#allocation10], %s3555_s29, %s3555_s29, %s3556_s3  }
  0x4f   :  { %3541 = dma.done.wait [#allocation4], 3072  }
  0x50   :  { %3542 = vsyncadd [#allocation4], 4294964224 }
  0x51   :  { %3543 = dma.done.wait [#allocation7], 6144  }
  0x52   :  { %3544 = vsyncadd [#allocation7], 4294961152 }
  0x53   :  { %3545 = dma.done.wait [#allocation10], 3072  }
  0x54   :  { %3546 = vsyncadd [#allocation10], 4294964224  ;;  %v3559_v0 = vmov 0.0   ;;  %vm3560_vm0 = vmmov 0   ;;  %v3255_v1 = vld [vmem:[%s4114_s10] sm:$0xff]   ;;  %v3256_v2 = vld [vmem:[%s4114_s10 + $0x8] sm:$0xff]   ;;  %v216_v22 = vlaneseq }
  0x55   :  { %2875 = vmatprep.subr.bf16.mxu1 %v3559_v0  ;;  %2883 = vmatprep.mubr.msk.bf16.mxu1 %vm3560_vm0, %v3559_v0  ;;  %v3259_v3 = vld [vmem:[#allocation9 + $0x40] sm:$0xff]   ;;  %v3257_v4 = vld [vmem:[%s4114_s10 + $0x10] sm:$0xff]   ;;  %v3258_v6 = vld [vmem:[%s4114_s10 + $0x18] sm:$0xff]   ;;  %s4138_s28 = sld [smem:[#allocation26_spill]]  ;;  %vm168_vm1 = vcmask 523264   ;;  %vm656_vm6 = vcmask 1043456  }
  0x56   :  { %2907 = vmatprep.subr.bf16.mxu0 %v3559_v0  ;;  %2923 = vmatprep.mubr.msk.bf16.mxu0 %vm3560_vm0, %v3559_v0  ;;  %v3260_v5 = vld [vmem:[#allocation9 + $0x48] sm:$0xff]   ;;  %v3262_v7 = vld [vmem:[#allocation9 + $0x50] sm:$0xff]   ;;  %v3261_v9 = vld [vmem:[#allocation9] sm:$0xff]   ;;  %v637_v23 = vand.u32 127, %v216_v22  ;;  %v3805_v24 = vshrl.u32 %v216_v22, 7  ;;  %vm652_vm11 = vcmask 64512  }
  0x57   :  { %2876 = vmatpush3.bf16.msra.mxu1 %v3255_v1  ;;  %2908 = vmatpush3.bf16.msra.mxu0 %v3259_v3  ;;  %v3264_v10 = vld [vmem:[#allocation9 + $0x58] sm:$0xff]   ;;  %v3263_v11 = vld [vmem:[#allocation9 + $0x8] sm:$0xff]   ;;  %v3266_v12 = vld [vmem:[#allocation9 + $0x60] sm:$0xff]   ;;  %s4139_s16 = sld [smem:[#allocation25_spill]]  ;;  %vm590_vm14 = vcmask 261120   ;;  %s4140_s27 = sld [smem:[#allocation29_spill]] }
  0x58   :  { %2877 = vmatprep.subr.bf16.mxu1 %v3559_v0  ;;  %2909 = vmatprep.subr.bf16.mxu0 %v3559_v0  ;;  %v3265_v13 = vld [vmem:[#allocation9 + $0x10] sm:$0xff]   ;;  %v3268_v14 = vld [vmem:[#allocation9 + $0x68] sm:$0xff]   ;;  %v3267_v15 = vld [vmem:[#allocation9 + $0x18] sm:$0xff]   ;;  %v3807_v25 = vmul.u32 2, %v637_v23  ;;  %v3810_v26 = vadd.s32 8, %v3805_v24  ;;  %v222_v36 = vand.u32 3, %v3805_v24 }
  0x59   :  { %v3270_v16 = vld [vmem:[#allocation9 + $0x70] sm:$0xff]   ;;  %v3269_v17 = vld [vmem:[#allocation9 + $0x20] sm:$0xff]   ;;  %v3271_v18 = vld [vmem:[#allocation9 + $0x28] sm:$0xff]   ;;  %s4141_s12 = sld [smem:[#allocation24_spill]]  ;;  %vm1103_vm15 = vcmask 130048   ;;  %s4151_s24 = sld [smem:[#allocation28_spill]] }
  0x5a   :  { %v3272_v19 = vld [vmem:[#allocation9 + $0x78] sm:$0xff]   ;;  %v3273_v20 = vld [vmem:[#allocation9 + $0x30] sm:$0xff]   ;;  %v639_v27 = vsub.s32 %v3805_v24, %v3807_v25  ;;  %v640_v28 = vsub.s32 %v3810_v26, %v3807_v25  ;;  %vm230_vm9 = vcmp.ne.s32.totalorder %v222_v36, 0  ;;  %v3275_v42 = vld [vmem:[#allocation9 + $0x80] sm:$0xff]   ;;  %vm233_vm12 = vcmp.ne.s32.totalorder %v222_v36, 3 }
  0x5b   :  { %2878 = vmatpush3.bf16.msra.mxu1 %v3256_v2  ;;  %2910 = vmatpush3.bf16.msra.mxu0 %v3260_v5  ;;  %v128_v8 = vld [vmem:[%s4138_s28] sm:$0xf]  ;;  %vm2565_vm10 = vmpackc.low %vm230_vm9, %vm230_vm9  ;;  %v3276_v44 = vld [vmem:[#allocation9 + $0x88] sm:$0xff]   ;;  %s4142_s28 = sld [smem:[#allocation27_spill]] }
  0x5c   :  { %2879 = vmatprep.subr.bf16.mxu1 %v3559_v0  ;;  %2911 = vmatprep.subr.bf16.mxu0 %v3559_v0  ;;  %v3274_v21 = vld [vmem:[#allocation9 + $0x38] sm:$0xff]   ;;  %vm641_vm2 = vcmp.eq.s32.totalorder %v639_v27, 0  ;;  %vm643_vm3 = vcmp.eq.s32.totalorder %v639_v27, 1  ;;  %vm642_vm4 = vcmp.eq.s32.totalorder %v640_v28, 0  ;;  %vm644_vm5 = vcmp.eq.s32.totalorder %v640_v28, 1  ;;  %v3277_v45 = vld [vmem:[#allocation9 + $0x90] sm:$0xff]   ;;  %vm2584_vm13 = vmpackc.low %vm233_vm12, %vm233_vm12 }
  0x5d   :  { %v2551_v29 = vld [vmem:[%s4115_s11] ss:$0 sm:$0xff]  ;;  %vm645_vm7 = vmor %vm641_vm2, %vm643_vm3  ;;  %v3279_v47 = vld [vmem:[#allocation9 + $0xa0] sm:$0xff]   ;;  %s4143_s11 = sld [smem:[#allocation23_spill]] }
  0x5e   :  { %vm646_vm8 = vmor %vm642_vm4, %vm644_vm5  ;;  %v2593_v38 = vsel %vm645_vm7, 1.0, %v3559_v0  ;;  %v3278_v46 = vld [vmem:[#allocation9 + $0x98] sm:$0xff]   ;;  %v3280_v48 = vld [vmem:[#allocation9 + $0xa8] sm:$0xff]  }
  0x5f   :  { %2880 = vmatpush3.bf16.msra.mxu1 %v3257_v4  ;;  %2912 = vmatpush3.bf16.msra.mxu0 %v3262_v7  ;;  %v2594_v39 = vsel %vm646_vm8, 1.0, %v3559_v0  ;;  %v3281_v49 = vld [vmem:[#allocation9 + $0xb0] sm:$0xff]   ;;  %v3282_v50 = vld [vmem:[#allocation9 + $0xb8] sm:$0xff]   ;;  %v3284_v54 = vld [vmem:[%s4112_s8 + $0x8] sm:$0xff]  }
  0x60   :  { %2881 = vmatprep.subr.bf16.mxu1 %v3559_v0  ;;  %2913 = vmatprep.subr.bf16.mxu0 %v3559_v0  ;;  %v3826_v40 = vpack.c.bf16 %v2594_v39, %v2593_v38  ;;  %v3283_v52 = vld [vmem:[%s4112_s8] sm:$0xff]   ;;  %v3286_v56 = vld [vmem:[#allocation8 + $0x40] sm:$0xff]   ;;  %v3287_v58 = vld [vmem:[#allocation8 + $0x48] sm:$0xff]  }
  0x61   :  { %v3285_v55 = vld [vmem:[%s4139_s16] sm:$0xff]   ;;  %v3288_v57 = vld [vmem:[#allocation8] sm:$0xff]   ;;  %v3290_v59 = vld [vmem:[#allocation8 + $0x8] sm:$0xff]  }
  0x62   :  { %v3289_v60 = vld [vmem:[#allocation8 + $0x50] sm:$0xff]   ;;  %v3291_v61 = vld [vmem:[#allocation8 + $0x58] sm:$0xff]   ;;  %v3293_v63 = vld [vmem:[#allocation8 + $0x60] sm:$0xff]  }
  0x63   :  { %2882 = vmatpush3.bf16.msra.mxu1 %v3258_v6  ;;  %2914 = vmatpush3.bf16.msra.mxu0 %v3264_v10  ;;  %v3292_v62 = vld [vmem:[#allocation8 + $0x10] sm:$0xff]   ;;  %v3294_v1 = vld [vmem:[#allocation8 + $0x18] sm:$0xff]   ;;  %v3295_v2 = vld [vmem:[#allocation8 + $0x68] sm:$0xff]  }
  0x64   :  { %2887 = vmatprep.subr.bf16.mxu1 %v3559_v0  ;;  %2915 = vmatprep.subr.bf16.mxu0 %v3559_v0  ;;  %v3296_v3 = vld [vmem:[#allocation8 + $0x20] sm:$0xff]   ;;  %v3297_v4 = vld [vmem:[#allocation8 + $0x70] sm:$0xff]   ;;  %v3298_v5 = vld [vmem:[#allocation8 + $0x28] sm:$0xff]  }
  0x65   :  { %v3299_v6 = vld [vmem:[#allocation8 + $0x78] sm:$0xff]  }
  0x66   :  { %2884 = vmatmul.mubr.msk.bf16.vlgmr.msra.gmra.mrb[0].mxu1 %vm168_vm1, %v128_v8  ;;  %v3300_v7 = vld [vmem:[%s4140_s27] sm:$0xff]   ;;  %v3301_v8 = vld [vmem:[#allocation8 + $0x30] sm:$0xff]   ;;  %s4144_s27 = sld [smem:[#allocation30_spill]] }
  0x67   :  { %2888 = vmatpush3.bf16.msra.mxu1 %v3261_v9  ;;  %2903 = vmatprep.mubr.msk.bf16.mxu1 %vm3560_vm0, %v3559_v0  ;;  %v3302_v9 = vld [vmem:[#allocation8 + $0x38] sm:$0xff]  }
  0x68   :  { %2889 = vmatprep.subr.bf16.mxu1 %v3559_v0  ;;  %2916 = vmatpush3.bf16.msra.mxu0 %v3266_v12  ;;  %v2587_v27 = vld [vmem:[%s4123_s19] ss:$0 sm:$0xff] }
  0x69   :  { %2917 = vmatprep.subr.bf16.mxu0 %v3559_v0 }
  0x6b   :  { %2890 = vmatpush3.bf16.msra.mxu1 %v3263_v11 }
  0x6c   :  { %2891 = vmatprep.subr.bf16.mxu1 %v3559_v0  ;;  %2918 = vmatpush3.bf16.msra.mxu0 %v3268_v14 }
  0x6d   :  { %2919 = vmatprep.subr.bf16.mxu0 %v3559_v0 }
  0x6f   :  { %2892 = vmatpush3.bf16.msra.mxu1 %v3265_v13 }
  0x70   :  { %2893 = vmatprep.subr.bf16.mxu1 %v3559_v0  ;;  %2920 = vmatpush3.bf16.msra.mxu0 %v3270_v16 }
  0x71   :  { %2921 = vmatprep.subr.bf16.mxu0 %v3559_v0 }
  0x73   :  { %2894 = vmatpush3.bf16.msra.mxu1 %v3267_v15 }
  0x74   :  { %2895 = vmatprep.subr.bf16.mxu1 %v3559_v0  ;;  %2922 = vmatpush3.bf16.msra.mxu0 %v3272_v19 }
  0x75   :  { %2955 = vmatprep.subr.bf16.mxu0 %v3559_v0 }
  0x77   :  { %2896 = vmatpush3.bf16.msra.mxu1 %v3269_v17 }
  0x78   :  { %2897 = vmatprep.subr.bf16.mxu1 %v3559_v0 }
  0x7b   :  { %2898 = vmatpush3.bf16.msra.mxu1 %v3271_v18 }
  0x7c   :  { %2899 = vmatprep.subr.bf16.mxu1 %v3559_v0 }
  0x7f   :  { %2900 = vmatpush3.bf16.msra.mxu1 %v3273_v20 }
  0x80   :  { %2901 = vmatprep.subr.bf16.mxu1 %v3559_v0 }
  0x83   :  { %2902 = vmatpush3.bf16.msra.mxu1 %v3274_v21 }
  0x84   :  { %2927 = vmatprep.subr.bf16.mxu1 %v3559_v0 }
 0x139   :  { %v206_v30 = vpop.f32.mrb[0].mxu1 }
 0x13a   :  { %v207_v31 = vadd.f32 %v2551_v29, %v206_v30  ;;  %v2885_v32 = vpop.f32.mrb[1].mxu1 }
 0x13b   :  { %v209_v33 = vpop.f32.mrb[2].mxu1 }
 0x13c   :  { %v212_v34 = vpack.c.bf16 %v207_v31, %v207_v31  ;;  %213 = vst [vmem:[#allocation2 + $0x1] sm:$0xff] %v207_v31  ;;  %v2886_v35 = vpop.f32.mrb[3].mxu1  ;;  %v2588_v33 = vld [vmem:[%s4113_s9] ss:$0 sm:$0xff] }
 0x13e   :  { %2924 = vmatmul.mubr.bf16.vlgmr.msra.gmra.mrb[0].mxu0 %v212_v34  ;;  %v658_v37 = vsel %vm656_vm6, %v212_v34, 0 }
 0x13f   :  { %2956 = vmatpush3.bf16.msra.mxu0 %v658_v37  ;;  %2957 = vmatprep.mubr.msk.bf16.mxu0 %vm3560_vm0, %v3559_v0 }
 0x140   :  { %2961 = vmatprep.subr.bf16.mxu0 %v3559_v0 }
 0x143   :  { %v214_v41 = vld [vmem:[#allocation2] sm:$0xff] }
 0x144   :  { %v2566_v43 = vpack.c.bf16 %v214_v41, %v214_v41  ;;  %v215_v51 = vld [vmem:[#allocation2 + $0x2] sm:$0xff] }
 0x145   :  { %v2585_v53 = vpack.c.bf16 %v215_v51, %v215_v51  ;;  %v3304_v51 = vld [vmem:[#allocation8 + $0x80] sm:$0xff]  }
 0x146   :  { %2904 = vmatmul.mubr.msk.bf16.vlgmr.msra.gmra.mrb[4].mxu1 %vm2565_vm10, %v2566_v43  ;;  %2958 = vmatmul.mubr.msk.bf16.vlgmr.msra.gmra.mrb[4].mxu0 %vm652_vm11, %v3826_v40  ;;  %v3303_v43 = vld [vmem:[%s4141_s12] sm:$0xff]  }
 0x147   :  { %2928 = vmatpush3.bf16.msra.mxu1 %v3275_v42  ;;  %2943 = vmatprep.mubr.msk.bf16.mxu1 %vm3560_vm0, %v3559_v0 }
 0x148   :  { %2929 = vmatprep.subr.bf16.mxu1 %v3559_v0  ;;  %2977 = vmatprep.mubr.msk.bf16.mxu0 %vm3560_vm0, %v3559_v0 }
 0x149   :  { %2962 = vmatpush3.bf16.msra.mxu0 %v3288_v57  ;;  %v3307_v57 = vld [vmem:[#allocation8 + $0x90] sm:$0xff]  }
 0x14a   :  { %2963 = vmatprep.subr.bf16.mxu0 %v3559_v0 }
 0x14b   :  { %2930 = vmatpush3.bf16.msra.mxu1 %v3276_v44 }
 0x14c   :  { %2931 = vmatprep.subr.bf16.mxu1 %v3559_v0 }
 0x14d   :  { %2964 = vmatpush3.bf16.msra.mxu0 %v3290_v59 }
 0x14e   :  { %2965 = vmatprep.subr.bf16.mxu0 %v3559_v0 }
 0x14f   :  { %2932 = vmatpush3.bf16.msra.mxu1 %v3277_v45  ;;  %v714_v45 = vand.u32 7, %v3805_v24 }
 0x150   :  { %2933 = vmatprep.subr.bf16.mxu1 %v3559_v0 }
 0x151   :  { %2966 = vmatpush3.bf16.msra.mxu0 %v3292_v62  ;;  %vm734_vm1 = vcmp.ne.s32.totalorder %v714_v45, 0  ;;  %v3309_v62 = vld [vmem:[#allocation8 + $0xa0] sm:$0xff]  }
 0x152   :  { %2967 = vmatprep.subr.bf16.mxu0 %v3559_v0 }
 0x153   :  { %2934 = vmatpush3.bf16.msra.mxu1 %v3278_v46  ;;  %v721_v46 = vand.u32 7, %v3810_v26 }
 0x154   :  { %2935 = vmatprep.subr.bf16.mxu1 %v3559_v0 }
 0x155   :  { %2968 = vmatpush3.bf16.msra.mxu0 %v3294_v1  ;;  %vm735_vm2 = vcmp.ne.s32.totalorder %v721_v46, 0  ;;  %v3311_v1 = vld [vmem:[#allocation8 + $0xb0] sm:$0xff]   ;;  %vm740_vm12 = vcmp.ne.s32.totalorder %v721_v46, 7 }
 0x156   :  { %2969 = vmatprep.subr.bf16.mxu0 %v3559_v0  ;;  %vm2604_vm3 = vmpackc.low %vm735_vm2, %vm734_vm1 }
 0x157   :  { %2936 = vmatpush3.bf16.msra.mxu1 %v3279_v47  ;;  %v3888_v47 = vadd.s32 16, %v3805_v24 }
 0x158   :  { %2937 = vmatprep.subr.bf16.mxu1 %v3559_v0 }
 0x159   :  { %2970 = vmatpush3.bf16.msra.mxu0 %v3296_v3 }
 0x15a   :  { %2971 = vmatprep.subr.bf16.mxu0 %v3559_v0 }
 0x15b   :  { %2938 = vmatpush3.bf16.msra.mxu1 %v3280_v48  ;;  %v3891_v48 = vadd.s32 24, %v3805_v24 }
 0x15c   :  { %2939 = vmatprep.subr.bf16.mxu1 %v3559_v0 }
 0x15d   :  { %2972 = vmatpush3.bf16.msra.mxu0 %v3298_v5 }
 0x15e   :  { %2973 = vmatprep.subr.bf16.mxu0 %v3559_v0 }
 0x15f   :  { %2940 = vmatpush3.bf16.msra.mxu1 %v3281_v49  ;;  %v1161_v49 = vsub.s32 %v3888_v47, %v3807_v25 }
 0x160   :  { %2941 = vmatprep.subr.bf16.mxu1 %v3559_v0 }
 0x161   :  { %2974 = vmatpush3.bf16.msra.mxu0 %v3301_v8  ;;  %vm1163_vm4 = vcmp.eq.s32.totalorder %v1161_v49, 0  ;;  %vm1165_vm5 = vcmp.eq.s32.totalorder %v1161_v49, 1  ;;  %v3315_v8 = vld [vmem:[#allocation6 + $0x10] sm:$0xff]  }
 0x162   :  { %2975 = vmatprep.subr.bf16.mxu0 %v3559_v0  ;;  %vm1167_vm9 = vmor %vm1163_vm4, %vm1165_vm5 }
 0x163   :  { %2942 = vmatpush3.bf16.msra.mxu1 %v3282_v50  ;;  %v1162_v50 = vsub.s32 %v3891_v48, %v3807_v25 }
 0x164   :  { %2947 = vmatprep.subr.bf16.mxu1 %v3559_v0 }
 0x165   :  { %2976 = vmatpush3.bf16.msra.mxu0 %v3302_v9  ;;  %vm1164_vm7 = vcmp.eq.s32.totalorder %v1162_v50, 0  ;;  %vm1166_vm8 = vcmp.eq.s32.totalorder %v1162_v50, 1  ;;  %v3316_v9 = vld [vmem:[#allocation6 + $0x18] sm:$0xff]   ;;  %v3962_v50 = vadd.s32 56, %v3805_v24 }
 0x166   :  { %2944 = vmatmul.mubr.msk.bf16.vlgmr.msra.gmra.mrb[8].mxu1 %vm2584_vm13, %v2585_v53  ;;  %3001 = vmatprep.subr.bf16.mxu0 %v3559_v0  ;;  %vm1168_vm10 = vmor %vm1164_vm7, %vm1166_vm8 }
 0x167   :  { %2948 = vmatpush3.bf16.msra.mxu1 %v3283_v52  ;;  %2951 = vmatprep.mubr.msk.bf16.mxu1 %vm3560_vm0, %v3559_v0  ;;  %v3305_v52 = vld [vmem:[%s4141_s12 + $0x8] sm:$0xff]   ;;  %v2634_v59 = vsel %vm1168_vm10, 1.0, %v3559_v0 }
 0x168   :  { %2949 = vmatprep.subr.bf16.mxu1 %v3559_v0 }
 0x16b   :  { %2950 = vmatpush3.bf16.msra.mxu1 %v3284_v54 }
 0x16c   :  { %2981 = vmatprep.subr.bf16.mxu1 %v3559_v0 }
 0x16e   :  { %2952 = vmatmul.mubr.msk.bf16.vlgmr.msra.gmra.mrb[12].mxu1 %vm590_vm14, %v3285_v55 }
 0x16f   :  { %2997 = vmatprep.mubr.msk.bf16.mxu1 %vm3560_vm0, %v3559_v0  ;;  %2982 = vmatpush3.bf16.msra.mxu1 %v3286_v56  ;;  %v3306_v56 = vld [vmem:[#allocation8 + $0x88] sm:$0xff]  }
 0x170   :  { %2983 = vmatprep.subr.bf16.mxu1 %v3559_v0 }
 0x173   :  { %2984 = vmatpush3.bf16.msra.mxu1 %v3287_v58  ;;  %v2633_v58 = vsel %vm1167_vm9, 1.0, %v3559_v0  ;;  %vm3561_vm9 = vmmov 1  }
 0x174   :  { %2985 = vmatprep.subr.bf16.mxu1 %v3559_v0 }
 0x177   :  { %2986 = vmatpush3.bf16.msra.mxu1 %v3289_v60  ;;  %v3910_v60 = vpack.c.bf16 %v2634_v59, %v2633_v58  ;;  %v3341_v59 = vld [vmem:[#allocation3] sm:$0xff]  }
 0x178   :  { %2987 = vmatprep.subr.bf16.mxu1 %v3559_v0 }
 0x17b   :  { %2988 = vmatpush3.bf16.msra.mxu1 %v3291_v61  ;;  %v3308_v61 = vld [vmem:[#allocation8 + $0x98] sm:$0xff]  }
 0x17c   :  { %2989 = vmatprep.subr.bf16.mxu1 %v3559_v0 }
 0x17f   :  { %2990 = vmatpush3.bf16.msra.mxu1 %v3293_v63  ;;  %v3310_v63 = vld [vmem:[#allocation8 + $0xa8] sm:$0xff]  }
 0x180   :  { %2991 = vmatprep.subr.bf16.mxu1 %v3559_v0 }
 0x183   :  { %2992 = vmatpush3.bf16.msra.mxu1 %v3295_v2  ;;  %v3312_v2 = vld [vmem:[#allocation8 + $0xb8] sm:$0xff]  }
 0x184   :  { %2993 = vmatprep.subr.bf16.mxu1 %v3559_v0 }
 0x187   :  { %2994 = vmatpush3.bf16.msra.mxu1 %v3297_v4 }
 0x188   :  { %2995 = vmatprep.subr.bf16.mxu1 %v3559_v0 }
 0x18b   :  { %2996 = vmatpush3.bf16.msra.mxu1 %v3299_v6  ;;  %v3313_v6 = vld [vmem:[#allocation6] sm:$0xff]  }
 0x18c   :  { %3021 = vmatprep.subr.bf16.mxu1 %v3300_v7 }
 0x211   :  { %v439_v10 = vpop.f32.mrb[0].mxu0 }
 0x212   :  { %v2925_v11 = vpop.f32.mrb[1].mxu0 }
 0x213   :  { %v442_v12 = vpop.f32.mrb[2].mxu0 }
 0x214   :  { %v2926_v13 = vpop.f32.mrb[3].mxu0  ;;  %v3317_v12 = vld [vmem:[%s4143_s11] sm:$0xff]  }
 0x215   :  { %v3318_v13 = vld [vmem:[#allocation6 + $0x20] sm:$0xff]  }
 0x219   :  { %v351_v14 = vpop.f32.mrb[4].mxu1  ;;  %v694_v15 = vpop.f32.mrb[4].mxu0 }
 0x21a   :  { %v440_v16 = vadd.f32 %v439_v10, %v351_v14  ;;  %v2905_v17 = vpop.f32.mrb[5].mxu1  ;;  %v2959_v18 = vpop.f32.mrb[5].mxu0  ;;  %v1682_v10 = vld [vmem:[%s4142_s28] sm:$0xf]  ;;  %v3319_v14 = vld [vmem:[%s4143_s11 + $0x8] sm:$0xff]  }
 0x21b   :  { %v354_v19 = vpop.f32.mrb[6].mxu1  ;;  %v697_v20 = vpop.f32.mrb[6].mxu0  ;;  %v1723_v11 = vsel %vm656_vm6, %v1682_v10, 0  ;;  %v3322_v17 = vld [vmem:[#allocation6 + $0x30] sm:$0xff]  }
 0x21c   :  { %v2906_v21 = vpop.f32.mrb[7].mxu1  ;;  %v2960_v22 = vpop.f32.mrb[7].mxu0  ;;  %v3323_v18 = vld [vmem:[%s4143_s11 + $0x18] sm:$0xff]   ;;  %v3324_v19 = vld [vmem:[#allocation6 + $0x38] sm:$0xff]  }
 0x239   :  { %v544_v23 = vpop.f32.mrb[8].mxu1 }
 0x23a   :  { %v550_v28 = vadd.f32 %v544_v23, %v440_v16  ;;  %v2945_v29 = vpop.f32.mrb[9].mxu1  ;;  %v3321_v16 = vld [vmem:[%s4143_s11 + $0x10] sm:$0xff]  }
 0x23b   :  { %v547_v30 = vpop.f32.mrb[10].mxu1 }
 0x23c   :  { %v558_v31 = vadd.f32 %v2587_v27, %v550_v28  ;;  %v2946_v32 = vpop.f32.mrb[11].mxu1 }
 0x23e   :  { %559 = vst [vmem:[#allocation15] sm:$0xff] %v558_v31 }
 0x241   :  { %v628_v34 = vpop.f32.mrb[12].mxu1 }
 0x242   :  { %v629_v35 = vadd.f32 %v2588_v33, %v628_v34  ;;  %v2953_v36 = vpop.f32.mrb[13].mxu1  ;;  %v1791_v34 = vadd.s32 40, %v3805_v24 }
 0x243   :  { %v631_v37 = vpop.f32.mrb[14].mxu1 }
 0x244   :  { %v701_v38 = vadd.f32 %v694_v15, %v629_v35  ;;  %v632_v39 = vadd.f32 %v2588_v33, %v631_v37  ;;  %v2954_v41 = vpop.f32.mrb[15].mxu1  ;;  %v3320_v15 = vld [vmem:[#allocation6 + $0x28] sm:$0xff]   ;;  %v2627_v35 = vld [vmem:[%s4144_s27] ss:$0 sm:$0xff] }
 0x246   :  { %704 = vst [vmem:[#allocation2 + $0x1] sm:$0xff] %v701_v38  ;;  %v702_v42 = vadd.f32 %v697_v20, %v632_v39  ;;  %v3942_v20 = vld [vmem:[#allocation6 + $0x40] sm:$0xff]  }
 0x248   :  { %v703_v44 = vpack.c.bf16 %v702_v42, %v701_v38  ;;  %705 = vst [vmem:[#allocation2 + $0x9] sm:$0xff] %v702_v42  ;;  %v1795_v38 = vsub.s32 %v1791_v34, %v3807_v25  ;;  %v1792_v42 = vadd.s32 48, %v3805_v24 }
 0x24a   :  { %2998 = vmatmul.mubr.bf16.vlgmr.msra.gmra.mrb[16].mxu1 %v703_v44  ;;  %vm1803_vm1 = vcmp.eq.s32.totalorder %v1795_v38, 1 }
 0x24b   :  { %3022 = vmatpush3.bf16.msra.mxu1 %v3300_v7  ;;  %3023 = vmatprep.mubr.msk.bf16.mxu1 %vm1103_vm15, %v3303_v43  ;;  %v3314_v7 = vld [vmem:[#allocation6 + $0x8] sm:$0xff]  }
 0x24c   :  { %3027 = vmatprep.subr.bf16.mxu1 %v703_v44 }
 0x24d   :  { %v706_v53 = vld [vmem:[#allocation2] sm:$0xff] }
 0x24f   :  { %v707_v54 = vld [vmem:[#allocation2 + $0x8] sm:$0xff] }
 0x250   :  { %v2605_v55 = vpack.c.bf16 %v707_v54, %v706_v53  ;;  %v708_v3 = vld [vmem:[#allocation2 + $0x2] sm:$0xff]  ;;  %v709_v4 = vld [vmem:[#allocation2 + $0xa] sm:$0xff]  ;;  %v1796_v54 = vsub.s32 %v1792_v42, %v3807_v25 }
 0x251   :  { %v2624_v5 = vpack.c.bf16 %v709_v4, %v708_v3 }
 0x252   :  { %2978 = vmatmul.mubr.msk.bf16.vlgmr.msra.gmra.mrb[8].mxu0 %vm2604_vm3, %v2605_v55  ;;  %3024 = vmatmul.mubr.msk.bf16.vlgmr.msra.gmra.mrb[20].mxu1 %vm1103_vm15, %v3305_v52  ;;  %v1264_v52 = vand.u32 15, %v3888_v47  ;;  %vm1800_vm7 = vcmp.eq.s32.totalorder %v1796_v54, 0  ;;  %vm1804_vm8 = vcmp.eq.s32.totalorder %v1796_v54, 1 }
 0x253   :  { %3002 = vmatpush3.bf16.msra.mxu0 %v3304_v51  ;;  %3028 = vmatpush3.bf16.msra.mxu1 %v703_v44 }
 0x254   :  { %3003 = vmatprep.subr.bf16.mxu0 %v3559_v0  ;;  %3029 = vmatprep.mubr.msk.bf16.mxu1 %vm1103_vm15, %v3826_v40  ;;  %vm1296_vm5 = vcmp.ne.s32.totalorder %v1264_v52, 0  ;;  %v3349_v52 = vld [vmem:[#allocation3 + $0x40] sm:$0xff]  }
 0x255   :  { %3017 = vmatprep.mubr.msk.bf16.mxu0 %vm3560_vm0, %v3559_v0  ;;  %vm739_vm0 = vcmp.ne.s32.totalorder %v714_v45, 7  ;;  %3033 = vmatprep.subr.bf16.mxu1 %v3313_v6  ;;  %v1250_v45 = vand.u32 15, %v3805_v24 }
 0x256   :  { %vm2623_vm13 = vmpackc.low %vm740_vm12, %vm739_vm0 }
 0x257   :  { %3004 = vmatpush3.bf16.msra.mxu0 %v3306_v56  ;;  %vm1294_vm3 = vcmp.ne.s32.totalorder %v1250_v45, 0  ;;  %v1797_v56 = vsub.s32 %v3962_v50, %v3807_v25  ;;  %vm3979_vm0 = vmpackc.low %vm3561_vm9, %vm1296_vm5  ;;  %v3345_v45 = vld [vmem:[#allocation3 + $0x20] sm:$0xff]  }
 0x258   :  { %3005 = vmatprep.subr.bf16.mxu0 %v3559_v0  ;;  %vm3972_vm10 = vmpackc.low %vm3561_vm9, %vm1294_vm3 }
 0x259   :  { %vm1801_vm12 = vcmp.eq.s32.totalorder %v1797_v56, 0 }
 0x25b   :  { %3006 = vmatpush3.bf16.msra.mxu0 %v3307_v57 }
 0x25c   :  { %3007 = vmatprep.subr.bf16.mxu0 %v3559_v0 }
 0x25e   :  { %3030 = vmatmul.mubr.msk.bf16.vlgmr.msra.gmra.mrb[20].mxu1 %vm1103_vm15, %v3910_v60  ;;  %vm1799_vm15 = vcmp.eq.s32.totalorder %v1795_v38, 0  ;;  %v3339_v38 = vld [vmem:[#allocation6 + $0xb0] sm:$0xff]  }
 0x25f   :  { %3008 = vmatpush3.bf16.msra.mxu0 %v3308_v61  ;;  %3034 = vmatpush3.bf16.msra.mxu1 %v3313_v6  ;;  %vm1807_vm4 = vmor %vm1799_vm15, %vm1803_vm1  ;;  %v3326_v6 = vld [vmem:[#allocation6 + $0x48] sm:$0xff]  }
 0x260   :  { %3009 = vmatprep.subr.bf16.mxu0 %v3559_v0  ;;  %3035 = vmatprep.subr.bf16.mxu1 %v3314_v7  ;;  %v2684_v58 = vsel %vm1807_vm4, 1.0, %v3559_v0 }
 0x263   :  { %3010 = vmatpush3.bf16.msra.mxu0 %v3309_v62  ;;  %3036 = vmatpush3.bf16.msra.mxu1 %v3314_v7  ;;  %v3342_v7 = vld [vmem:[#allocation3 + $0x8] sm:$0xff]   ;;  %v1935_v62 = vand.u32 31, %v3805_v24 }
 0x264   :  { %3011 = vmatprep.subr.bf16.mxu0 %v3559_v0  ;;  %3037 = vmatprep.subr.bf16.mxu1 %v3315_v8 }
 0x265   :  { %vm2027_vm3 = vcmp.ne.s32.totalorder %v1935_v62, 0 }
 0x266   :  { %vm2699_vm4 = vmpackc.low %vm3561_vm9, %vm2027_vm3 }
 0x267   :  { %3012 = vmatpush3.bf16.msra.mxu0 %v3310_v63  ;;  %3038 = vmatpush3.bf16.msra.mxu1 %v3315_v8 }
 0x268   :  { %3013 = vmatprep.subr.bf16.mxu0 %v3559_v0  ;;  %3039 = vmatprep.subr.bf16.mxu1 %v3316_v9 }
 0x26b   :  { %3014 = vmatpush3.bf16.msra.mxu0 %v3311_v1  ;;  %3040 = vmatpush3.bf16.msra.mxu1 %v3316_v9 }
 0x26c   :  { %3015 = vmatprep.subr.bf16.mxu0 %v3559_v0  ;;  %3041 = vmatprep.subr.bf16.mxu1 %v3318_v13 }
 0x26f   :  { %3016 = vmatpush3.bf16.msra.mxu0 %v3312_v2  ;;  %3042 = vmatpush3.bf16.msra.mxu1 %v3318_v13  ;;  %v3343_v13 = vld [vmem:[#allocation3 + $0x10] sm:$0xff]  }
 0x270   :  { %3239 = vmatprep.subr.msk.bf16.mxu0 %vm656_vm6, %v1682_v10  ;;  %3043 = vmatprep.subr.bf16.mxu1 %v3320_v15  ;;  %v3327_v10 = vld [vmem:[#allocation6 + $0x50] sm:$0xff]  }
 0x272   :  { %3018 = vmatmul.mubr.msk.bf16.vlgmr.msra.gmra.mrb[12].mxu0 %vm2623_vm13, %v2624_v5  ;;  %vm1805_vm13 = vcmp.eq.s32.totalorder %v1797_v56, 1 }
 0x273   :  { %3094 = vmatpush3.bf16.msra.mxu0 %v1723_v11  ;;  %3095 = vmatprep.mubr.msk.bf16.mxu0 %vm652_vm11, %v3317_v12 }
 0x274   :  { %3044 = vmatpush3.bf16.msra.mxu1 %v3320_v15 }
 0x275   :  { %3045 = vmatprep.subr.bf16.mxu1 %v3322_v17 }
 0x278   :  { %3046 = vmatpush3.bf16.msra.mxu1 %v3322_v17 }
 0x279   :  { %3047 = vmatprep.subr.bf16.mxu1 %v3324_v19 }
 0x27a   :  { %3096 = vmatmul.mubr.msk.bf16.vlgmr.msra.gmra.mrb[16].mxu0 %vm652_vm11, %v3319_v14 }
 0x27b   :  { %3099 = vmatprep.mubr.msk.bf16.mxu0 %vm652_vm11, %v3321_v16 }
 0x27c   :  { %3048 = vmatpush3.bf16.msra.mxu1 %v3324_v19  ;;  %v3328_v19 = vld [vmem:[#allocation6 + $0x58] sm:$0xff]  }
 0x27d   :  { %3053 = vmatprep.subr.bf16.mxu1 %v3942_v20 }
 0x282   :  { %3100 = vmatmul.mubr.msk.bf16.gmra.mrb[20].mxu0 %vm652_vm11, %v3323_v18 }
 0x283   :  { %3107 = vmatprep.mubr.msk.bf16.mxu0 %vm590_vm14, %v3826_v40  ;;  %v3950_v40 = vadd.s32 32, %v3805_v24 }
 0x285   :  { %v1794_v36 = vsub.s32 %v3950_v40, %v3807_v25 }
 0x287   :  { %vm1798_vm6 = vcmp.eq.s32.totalorder %v1794_v36, 0  ;;  %vm1802_vm11 = vcmp.eq.s32.totalorder %v1794_v36, 1  ;;  %v3337_v36 = vld [vmem:[#allocation6 + $0xa0] sm:$0xff]  }
 0x288   :  { %vm1806_vm2 = vmor %vm1798_vm6, %vm1802_vm11 }
 0x289   :  { %v2683_v57 = vsel %vm1806_vm2, 1.0, %v3559_v0  ;;  %vm3983_vm6 = vmor %vm1800_vm7, %vm1804_vm8 }
 0x28a   :  { %v1818_v3 = vpack.c.bf16 %v2684_v58, %v2683_v57  ;;  %vm1809_vm11 = vmor %vm1801_vm12, %vm1805_vm13  ;;  %v2685_v8 = vsel %vm3983_vm6, 1.0, %v3559_v0 }
 0x28b   :  { %v2686_v9 = vsel %vm1809_vm11, 1.0, %v3559_v0 }
 0x28c   :  { %v1819_v12 = vpack.c.bf16 %v2686_v9, %v2685_v8 }
 0x31d   :  { %v948_v21 = vpop.f32.mrb[16].mxu1 }
 0x31e   :  { %v2999_v22 = vpop.f32.mrb[17].mxu1 }
 0x31f   :  { %v951_v23 = vpop.f32.mrb[18].mxu1  ;;  %v3329_v22 = vld [vmem:[#allocation6 + $0x60] sm:$0xff]  }
 0x320   :  { %v3000_v27 = vpop.f32.mrb[19].mxu1 }
 0x321   :  { %v3331_v27 = vld [vmem:[#allocation6 + $0x70] sm:$0xff]  }
 0x325   :  { %v859_v28 = vpop.f32.mrb[8].mxu0 }
 0x326   :  { %v3945_v29 = vadd.f32 %v948_v21, %v859_v28  ;;  %v2979_v30 = vpop.f32.mrb[9].mxu0  ;;  %v3332_v28 = vld [vmem:[#allocation6 + $0x78] sm:$0xff]  }
 0x327   :  { %v862_v31 = vpop.f32.mrb[10].mxu0  ;;  %v3333_v30 = vld [vmem:[#allocation6 + $0x80] sm:$0xff]  }
 0x328   :  { %v3947_v32 = vadd.f32 %v951_v23, %v862_v31  ;;  %v2980_v33 = vpop.f32.mrb[11].mxu0  ;;  %v3330_v23 = vld [vmem:[#allocation6 + $0x68] sm:$0xff]  }
 0x329   :  { %v3334_v33 = vld [vmem:[#allocation6 + $0x88] sm:$0xff]  }
 0x331   :  { %v3031_v37 = vpop.f32.mrb[20].mxu1 }
 0x332   :  { %v3191_v39 = vadd.f32 %v3031_v37, %v2627_v35  ;;  %v1213_v41 = vpop.f32.mrb[21].mxu1  ;;  %v3338_v37 = vld [vmem:[#allocation6 + $0xa8] sm:$0xff]  }
 0x333   :  { %v3192_v43 = vadd.f32 %v2627_v35, %v1213_v41  ;;  %v3032_v44 = vpop.f32.mrb[22].mxu1  ;;  %v1271_v41 = vand.u32 15, %v3891_v48 }
 0x334   :  { %1236 = vst [vmem:[#allocation2 + $0x11] sm:$0xff] %v3191_v39  ;;  %v3193_v46 = vadd.f32 %v3032_v44, %v2627_v35  ;;  %v1216_v49 = vpop.f32.mrb[23].mxu1 }
 0x335   :  { %1234 = vst [vmem:[#allocation2 + $0x1] sm:$0xff] %v3192_v43  ;;  %v3194_v51 = vadd.f32 %v2627_v35, %v1216_v49  ;;  %v3335_v35 = vld [vmem:[#allocation6 + $0x90] sm:$0xff]   ;;  %vm1307_vm1 = vcmp.ne.s32.totalorder %v1271_v41, 15 }
 0x336   :  { %v3965_v53 = vpack.c.bf16 %v3193_v46, %v3191_v39  ;;  %1237 = vst [vmem:[#allocation2 + $0x19] sm:$0xff] %v3193_v46  ;;  %v3340_v39 = vld [vmem:[#allocation6 + $0xb8] sm:$0xff]   ;;  %vm2670_vm2 = vmpackc.low %vm1307_vm1, %vm3561_vm9  ;;  %v3346_v46 = vld [vmem:[#allocation3 + $0x28] sm:$0xff]  }
 0x337   :  { %v1232_v55 = vpack.c.bf16 %v3194_v51, %v3192_v43  ;;  %1235 = vst [vmem:[#allocation2 + $0x9] sm:$0xff] %v3194_v51  ;;  %v3347_v49 = vld [vmem:[#allocation3 + $0x30] sm:$0xff]   ;;  %v3348_v51 = vld [vmem:[#allocation3 + $0x38] sm:$0xff]  }
 0x339   :  { %3103 = vmatprep.subr.bf16.mxu0 %v1232_v55 }
 0x33a   :  { %3104 = vmatpush3.bf16.msra.mxu0 %v1232_v55 }
 0x33b   :  { %3105 = vmatprep.subr.bf16.mxu0 %v3965_v53 }
 0x33c   :  { %v1238_v63 = vld [vmem:[#allocation2] sm:$0xff] }
 0x33d   :  { %v1241_v61 = vld [vmem:[#allocation2 + $0x18] sm:$0xff] }
 0x33e   :  { %3106 = vmatpush3.bf16.msra.mxu0 %v3965_v53  ;;  %v1239_v1 = vld [vmem:[#allocation2 + $0x8] sm:$0xff]  ;;  %v1240_v2 = vld [vmem:[#allocation2 + $0x10] sm:$0xff]  ;;  %v1245_v43 = vld [vmem:[#allocation2 + $0x1a] sm:$0xff] }
 0x33f   :  { %v2646_v4 = vpack.c.bf16 %v1239_v1, %v1238_v63  ;;  %v2649_v5 = vpack.c.bf16 %v1241_v61, %v1240_v2  ;;  %3115 = vmatprep.subr.bf16.mxu0 %v3341_v59  ;;  %v1242_v31 = vld [vmem:[#allocation2 + $0x2] sm:$0xff]  ;;  %v1244_v42 = vld [vmem:[#allocation2 + $0x12] sm:$0xff] }
 0x340   :  { %v2671_v44 = vpack.c.bf16 %v1245_v43, %v1244_v42 }
 0x341   :  { %3049 = vmatprep.mubr.msk.bf16.mxu1 %vm3972_vm10, %v2646_v4  ;;  %3108 = vmatmul.mubr.msk.bf16.vlgmr.msra.gmra.mrb[16].mxu0 %vm590_vm14, %v3910_v60  ;;  %v2626_v60 = vld [vmem:[%s4121_s17] ss:$0 sm:$0xff] }
 0x342   :  { %3050 = vmatmul.mubr.msk.bf16.vlgmr.msra.gmra.mrb[24].mxu1 %vm3979_vm0, %v2649_v5  ;;  %3111 = vmatprep.mubr.msk.bf16.mxu0 %vm590_vm14, %v1818_v3 }
 0x343   :  { %3054 = vmatpush3.bf16.msra.mxu1 %v3942_v20  ;;  %3069 = vmatprep.mubr.bf16.mxu1 %v1232_v55  ;;  %v3344_v20 = vld [vmem:[#allocation3 + $0x18] sm:$0xff]  }
 0x344   :  { %3055 = vmatprep.subr.bf16.mxu1 %v3326_v6  ;;  %3116 = vmatpush3.bf16.msra.mxu0 %v3341_v59 }
 0x345   :  { %v1054_v11 = vpop.f32.mrb[12].mxu0  ;;  %3117 = vmatprep.subr.bf16.mxu0 %v3342_v7 }
 0x346   :  { %v1061_v14 = vadd.f32 %v1054_v11, %v3945_v29  ;;  %v3019_v15 = vpop.f32.mrb[13].mxu0  ;;  %v1257_v29 = vand.u32 15, %v3810_v26  ;;  %v3336_v26 = vld [vmem:[#allocation6 + $0x98] sm:$0xff]  }
 0x347   :  { %v1057_v16 = vpop.f32.mrb[14].mxu0  ;;  %3056 = vmatpush3.bf16.msra.mxu1 %v3326_v6 }
 0x348   :  { %v1070_v0 = vadd.f32 %v2626_v60, %v1061_v14  ;;  %v1062_v17 = vadd.f32 %v1057_v16, %v3947_v32  ;;  %v3020_v18 = vpop.f32.mrb[15].mxu0  ;;  %3057 = vmatprep.subr.bf16.mxu1 %v3327_v10  ;;  %3118 = vmatpush3.bf16.msra.mxu0 %v3342_v7  ;;  %v1243_v32 = vld [vmem:[#allocation2 + $0xa] sm:$0xff] }
 0x349   :  { %3112 = vmatmul.mubr.msk.bf16.gmra.mrb[20].mxu0 %vm590_vm14, %v1819_v12  ;;  %3119 = vmatprep.subr.bf16.mxu0 %v3343_v13  ;;  %vm1305_vm14 = vcmp.ne.s32.totalorder %v1257_v29, 15  ;;  %v2668_v34 = vpack.c.bf16 %v1243_v32, %v1242_v31  ;;  %v1963_v12 = vand.u32 31, %v3950_v40  ;;  %v3350_v16 = vld [vmem:[#allocation3 + $0x48] sm:$0xff]   ;;  %v3356_v29 = vld [vmem:[#allocation3 + $0x78] sm:$0xff]   ;;  %v3359_v32 = vld [vmem:[#allocation3 + $0x90] sm:$0xff]  }
 0x34a   :  { %1072 = vst [vmem:[#allocation14] sm:$0xff] %v1070_v0  ;;  %v1071_v21 = vadd.f32 %v2626_v60, %v1062_v17  ;;  %vm2667_vm15 = vmpackc.low %vm1305_vm14, %vm3561_vm9  ;;  %v3351_v0 = vld [vmem:[#allocation3 + $0x50] sm:$0xff]   ;;  %v3358_v31 = vld [vmem:[#allocation3 + $0x88] sm:$0xff]  }
 0x34b   :  { %3058 = vmatpush3.bf16.msra.mxu1 %v3327_v10  ;;  %vm2031_vm5 = vcmp.ne.s32.totalorder %v1963_v12, 0 }
 0x34c   :  { %1073 = vst [vmem:[#allocation14 + $0x8] sm:$0xff] %v1071_v21  ;;  %3059 = vmatprep.subr.bf16.mxu1 %v3328_v19  ;;  %3120 = vmatpush3.bf16.msra.mxu0 %v3343_v13  ;;  %vm2702_vm7 = vmpackc.low %vm3561_vm9, %vm2031_vm5 }
 0x34d   :  { %3121 = vmatprep.subr.bf16.mxu0 %v3344_v20 }
 0x34f   :  { %3060 = vmatpush3.bf16.msra.mxu1 %v3328_v19 }
 0x350   :  { %3061 = vmatprep.subr.bf16.mxu1 %v3329_v22  ;;  %3122 = vmatpush3.bf16.msra.mxu0 %v3344_v20 }
 0x351   :  { %3123 = vmatprep.subr.bf16.mxu0 %v3345_v45 }
 0x353   :  { %3062 = vmatpush3.bf16.msra.mxu1 %v3329_v22  ;;  %v3352_v22 = vld [vmem:[#allocation3 + $0x58] sm:$0xff]  }
 0x354   :  { %3063 = vmatprep.subr.bf16.mxu1 %v3330_v23  ;;  %3124 = vmatpush3.bf16.msra.mxu0 %v3345_v45  ;;  %v3363_v45 = vld [vmem:[#allocation3 + $0xb0] sm:$0xff]  }
 0x355   :  { %3125 = vmatprep.subr.bf16.mxu0 %v3346_v46 }
 0x357   :  { %3064 = vmatpush3.bf16.msra.mxu1 %v3330_v23  ;;  %v3353_v23 = vld [vmem:[#allocation3 + $0x60] sm:$0xff]  }
 0x358   :  { %3065 = vmatprep.subr.bf16.mxu1 %v3331_v27  ;;  %3126 = vmatpush3.bf16.msra.mxu0 %v3346_v46 }
 0x359   :  { %3127 = vmatprep.subr.bf16.mxu0 %v3347_v49 }
 0x35b   :  { %3066 = vmatpush3.bf16.msra.mxu1 %v3331_v27  ;;  %v3354_v27 = vld [vmem:[#allocation3 + $0x68] sm:$0xff]  }
 0x35c   :  { %3067 = vmatprep.subr.bf16.mxu1 %v3332_v28  ;;  %3128 = vmatpush3.bf16.msra.mxu0 %v3347_v49 }
 0x35d   :  { %3129 = vmatprep.subr.bf16.mxu0 %v3348_v51 }
 0x35f   :  { %3068 = vmatpush3.bf16.msra.mxu1 %v3332_v28  ;;  %v3355_v28 = vld [vmem:[#allocation3 + $0x70] sm:$0xff]  }
 0x360   :  { %3073 = vmatprep.subr.bf16.mxu1 %v3333_v30  ;;  %3130 = vmatpush3.bf16.msra.mxu0 %v3348_v51 }
 0x361   :  { %3139 = vmatprep.subr.bf16.mxu0 %v3349_v52 }
 0x362   :  { %3070 = vmatmul.mubr.bf16.vlgmr.msra.gmra.mrb[24].mxu1 %v3965_v53  ;;  %v2674_v53 = vld [vmem:[%s4151_s24] ss:$0 sm:$0xff] }
 0x363   :  { %3074 = vmatpush3.bf16.msra.mxu1 %v3333_v30  ;;  %3089 = vmatprep.mubr.msk.bf16.mxu1 %vm2667_vm15, %v2668_v34  ;;  %v3357_v30 = vld [vmem:[#allocation3 + $0x80] sm:$0xff]  }
 0x364   :  { %3075 = vmatprep.subr.bf16.mxu1 %v3334_v33 }
 0x367   :  { %3076 = vmatpush3.bf16.msra.mxu1 %v3334_v33 }
 0x368   :  { %3077 = vmatprep.subr.bf16.mxu1 %v3335_v35 }
 0x36b   :  { %3078 = vmatpush3.bf16.msra.mxu1 %v3335_v35  ;;  %v3360_v35 = vld [vmem:[#allocation3 + $0x98] sm:$0xff]  }
 0x36c   :  { %3079 = vmatprep.subr.bf16.mxu1 %v3336_v26 }
 0x36f   :  { %3080 = vmatpush3.bf16.msra.mxu1 %v3336_v26 }
 0x370   :  { %3081 = vmatprep.subr.bf16.mxu1 %v3337_v36 }
 0x373   :  { %3082 = vmatpush3.bf16.msra.mxu1 %v3337_v36  ;;  %v3361_v36 = vld [vmem:[#allocation3 + $0xa0] sm:$0xff]  }
 0x374   :  { %3083 = vmatprep.subr.bf16.mxu1 %v3338_v37 }
 0x377   :  { %3084 = vmatpush3.bf16.msra.mxu1 %v3338_v37  ;;  %v2673_v37 = vld [vmem:[%s4119_s15] ss:$0 sm:$0xff]  ;;  %s3562_s15 = smov [#allocation12]  }
 0x378   :  { %3085 = vmatprep.subr.bf16.mxu1 %v3339_v38  ;;  %s2504_s12 = sshll.u32 %s3562_s15, 4  ;;  %s2505_s12 = int_to_ptr.vmem [resolvable:$true] %s2504_s12 }
 0x379   :  { %s3453_s9 = scalar_lea.vmem %s2505_s12, 512  ;;  %p3458_p5 = scmp.lt.s32.totalorder %s2505_s12, %s2505_s12 }
 0x37a   :  { %p3454_p4 = scmp.ne.s32.totalorder %s2505_s12, %s3453_s9  ;;  %p3459_p6 = scmp.lt.s32.totalorder %s3453_s9, %s3453_s9 }
 0x37b   :  { %3086 = vmatpush3.bf16.msra.mxu1 %v3339_v38  ;;  %v3362_v38 = vld [vmem:[#allocation3 + $0xa8] sm:$0xff]  }
 0x37c   :  { %3087 = vmatprep.subr.bf16.mxu1 %v3340_v39  ;;  %p3460_p7 = por %p3459_p6, %p3458_p5 }
 0x37e   :  { %p3461_p8 = pnand %p3460_p7, %p3454_p4 }
 0x37f   :  { %3088 = vmatpush3.bf16.msra.mxu1 %v3340_v39 }
 0x382   :  { %3090 = vmatmul.mubr.msk.bf16.vlgmr.msra.gmra.mrb[24].mxu1 %vm2670_vm2, %v2671_v44 }
 0x414   :  { %v3109_v54 = vpop.f32.mrb[16].mxu0 }
 0x415   :  { %v4014_v55 = vadd.f32 %v3109_v54, %v2674_v53  ;;  %v1864_v56 = vpop.f32.mrb[17].mxu0 }
 0x416   :  { %v3196_v47 = vadd.f32 %v2674_v53, %v1864_v56  ;;  %v3110_v57 = vpop.f32.mrb[18].mxu0 }
 0x417   :  { %1909 = vst [vmem:[#allocation2 + $0x11] sm:$0xff] %v4014_v55  ;;  %v4017_v58 = vadd.f32 %v3110_v57, %v2674_v53  ;;  %v1867_v59 = vpop.f32.mrb[19].mxu0 }
 0x418   :  { %1907 = vst [vmem:[#allocation2 + $0x1] sm:$0xff] %v3196_v47  ;;  %v3198_v25 = vadd.f32 %v2674_v53, %v1867_v59 }
 0x419   :  { %v1904_v61 = vpack.c.bf16 %v4017_v58, %v4014_v55  ;;  %1910 = vst [vmem:[#allocation2 + $0x19] sm:$0xff] %v4017_v58  ;;  %v1984_v58 = vand.u32 31, %v3962_v50 }
 0x41a   :  { %v1903_v63 = vpack.c.bf16 %v3198_v25, %v3196_v47  ;;  %1908 = vst [vmem:[#allocation2 + $0x9] sm:$0xff] %v3198_v25 }
 0x41b   :  { %vm2054_vm0 = vcmp.ne.s32.totalorder %v1984_v58, 31 }
 0x41c   :  { %v3113_v1 = vpop.f32.mrb[20].mxu0  ;;  %vm2724_vm12 = vmpackc.low %vm2054_vm0, %vm3561_vm9 }
 0x41d   :  { %v4023_v2 = vadd.f32 %v3113_v1, %v2674_v53  ;;  %v1880_v3 = vpop.f32.mrb[21].mxu0 }
 0x41e   :  { %v3200_v4 = vadd.f32 %v2674_v53, %v1880_v3  ;;  %v3114_v5 = vpop.f32.mrb[22].mxu0 }
 0x41f   :  { %1913 = vst [vmem:[#allocation2 + $0x31] sm:$0xff] %v4023_v2  ;;  %v4026_v6 = vadd.f32 %v3114_v5, %v2674_v53  ;;  %v1883_v7 = vpop.f32.mrb[23].mxu0  ;;  %v1915_v10 = vld [vmem:[#allocation2] sm:$0xff] }
 0x420   :  { %1911 = vst [vmem:[#allocation2 + $0x21] sm:$0xff] %v3200_v4  ;;  %v3202_v8 = vadd.f32 %v2674_v53, %v1883_v7  ;;  %v1918_v9 = vld [vmem:[#allocation2 + $0x18] sm:$0xff]  ;;  %v1956_v53 = vand.u32 31, %v3891_v48 }
 0x421   :  { %v1906_v24 = vpack.c.bf16 %v4026_v6, %v4023_v2  ;;  %1914 = vst [vmem:[#allocation2 + $0x39] sm:$0xff] %v4026_v6  ;;  %v1916_v11 = vld [vmem:[#allocation2 + $0x8] sm:$0xff]  ;;  %v1917_v60 = vld [vmem:[#allocation2 + $0x10] sm:$0xff] }
 0x422   :  { %v1905_v13 = vpack.c.bf16 %v3202_v8, %v3200_v4  ;;  %1912 = vst [vmem:[#allocation2 + $0x29] sm:$0xff] %v3202_v8  ;;  %v2700_v14 = vpack.c.bf16 %v1916_v11, %v1915_v10  ;;  %v2044_v15 = vpack.c.bf16 %v1918_v9, %v1917_v60  ;;  %v1923_v33 = vld [vmem:[#allocation2 + $0x2] sm:$0xff]  ;;  %v1924_v34 = vld [vmem:[#allocation2 + $0xa] sm:$0xff]  ;;  %vm2050_vm8 = vcmp.ne.s32.totalorder %v1956_v53, 31  ;;  %v1925_v47 = vld [vmem:[#allocation2 + $0x12] sm:$0xff] }
 0x423   :  { %v2063_v26 = vpack.c.bf16 %v1924_v34, %v1923_v33  ;;  %vm2721_vm10 = vmpackc.low %vm2050_vm8, %vm3561_vm9 }
 0x424   :  { %3131 = vmatprep.mubr.msk.bf16.mxu0 %vm2699_vm4, %v2700_v14 }
 0x425   :  { %3132 = vmatmul.mubr.bf16.vlgmr.msra.gmra.mrb[24].mxu0 %v2044_v15 }
 0x426   :  { %3140 = vmatpush3.bf16.msra.mxu0 %v3349_v52  ;;  %v3364_v52 = vld [vmem:[#allocation3 + $0xb8] sm:$0xff]  }
 0x427   :  { %3141 = vmatprep.subr.bf16.mxu0 %v3350_v16  ;;  %v1919_v18 = vld [vmem:[#allocation2 + $0x20] sm:$0xff] }
 0x428   :  { %v1922_v17 = vld [vmem:[#allocation2 + $0x38] sm:$0xff] }
 0x429   :  { %v1920_v19 = vld [vmem:[#allocation2 + $0x28] sm:$0xff]  ;;  %v1921_v20 = vld [vmem:[#allocation2 + $0x30] sm:$0xff]  ;;  %v1926_v54 = vld [vmem:[#allocation2 + $0x1a] sm:$0xff] }
 0x42a   :  { %3142 = vmatpush3.bf16.msra.mxu0 %v3350_v16  ;;  %v2703_v21 = vpack.c.bf16 %v1920_v19, %v1919_v18  ;;  %v2046_v40 = vpack.c.bf16 %v1922_v17, %v1921_v20  ;;  %v1927_v55 = vld [vmem:[#allocation2 + $0x22] sm:$0xff]  ;;  %v1928_v56 = vld [vmem:[#allocation2 + $0x2a] sm:$0xff]  ;;  %v2722_v57 = vpack.c.bf16 %v1926_v54, %v1925_v47  ;;  %v1929_v25 = vld [vmem:[#allocation2 + $0x32] sm:$0xff] }
 0x42b   :  { %3143 = vmatprep.subr.bf16.mxu0 %v3351_v0  ;;  %v2065_v59 = vpack.c.bf16 %v1928_v56, %v1927_v55 }
 0x42c   :  { %3135 = vmatprep.mubr.msk.bf16.mxu0 %vm2702_vm7, %v2703_v21 }
 0x42d   :  { %3136 = vmatmul.mubr.bf16.gmra.mrb[28].mxu0 %v2046_v40 }
 0x42e   :  { %3144 = vmatpush3.bf16.msra.mxu0 %v3351_v0  ;;  %3155 = vmatprep.mubr.bf16.mxu0 %v1903_v63 }
 0x42f   :  { %3145 = vmatprep.subr.bf16.mxu0 %v3352_v22 }
 0x432   :  { %3146 = vmatpush3.bf16.msra.mxu0 %v3352_v22 }
 0x433   :  { %3147 = vmatprep.subr.bf16.mxu0 %v3353_v23 }
 0x436   :  { %3148 = vmatpush3.bf16.msra.mxu0 %v3353_v23 }
 0x437   :  { %3149 = vmatprep.subr.bf16.mxu0 %v3354_v27 }
 0x43a   :  { %3150 = vmatpush3.bf16.msra.mxu0 %v3354_v27 }
 0x43b   :  { %3151 = vmatprep.subr.bf16.mxu0 %v3355_v28 }
 0x43e   :  { %3152 = vmatpush3.bf16.msra.mxu0 %v3355_v28 }
 0x43f   :  { %3153 = vmatprep.subr.bf16.mxu0 %v3356_v29 }
 0x442   :  { %3154 = vmatpush3.bf16.msra.mxu0 %v3356_v29 }
 0x443   :  { %3163 = vmatprep.subr.bf16.mxu0 %v3357_v30 }
 0x445   :  { %3156 = vmatmul.mubr.bf16.vlgmr.msra.gmra.mrb[24].mxu0 %v1904_v61  ;;  %v1930_v61 = vld [vmem:[#allocation2 + $0x3a] sm:$0xff] }
 0x446   :  { %3159 = vmatprep.mubr.bf16.mxu0 %v1905_v13  ;;  %3164 = vmatpush3.bf16.msra.mxu0 %v3357_v30  ;;  %v2725_v48 = vpack.c.bf16 %v1930_v61, %v1929_v25 }
 0x447   :  { %3165 = vmatprep.subr.bf16.mxu0 %v3358_v31 }
 0x44a   :  { %3166 = vmatpush3.bf16.msra.mxu0 %v3358_v31 }
 0x44b   :  { %3167 = vmatprep.subr.bf16.mxu0 %v3359_v32 }
 0x44d   :  { %3160 = vmatmul.mubr.bf16.gmra.mrb[28].mxu0 %v1906_v24 }
 0x44e   :  { %3168 = vmatpush3.bf16.msra.mxu0 %v3359_v32  ;;  %3179 = vmatprep.mubr.bf16.mxu0 %v2063_v26 }
 0x44f   :  { %3169 = vmatprep.subr.bf16.mxu0 %v3360_v35 }
 0x452   :  { %3170 = vmatpush3.bf16.msra.mxu0 %v3360_v35 }
 0x453   :  { %3171 = vmatprep.subr.bf16.mxu0 %v3361_v36 }
 0x455   :  { %v3091_v39 = vpop.f32.mrb[24].mxu1 }
 0x456   :  { %v1668_v41 = vadd.f32 %v3091_v39, %v2673_v37  ;;  %v1640_v42 = vpop.f32.mrb[25].mxu1  ;;  %3172 = vmatpush3.bf16.msra.mxu0 %v3361_v36 }
 0x457   :  { %v1666_v43 = vadd.f32 %v2673_v37, %v1640_v42  ;;  %v3092_v44 = vpop.f32.mrb[26].mxu1  ;;  %3173 = vmatprep.subr.bf16.mxu0 %v3362_v38 }
 0x458   :  { %1672 = vst [vmem:[#allocation12 + $0x10] sm:$0xff] %v1668_v41  ;;  %v1669_v46 = vadd.f32 %v3092_v44, %v2673_v37  ;;  %v1643_v49 = vpop.f32.mrb[27].mxu1 }
 0x459   :  { %1670 = vst [vmem:[#allocation12] sm:$0xff] %v1666_v43  ;;  %v1667_v51 = vadd.f32 %v2673_v37, %v1643_v49 }
 0x45a   :  { %1673 = vst [vmem:[#allocation12 + $0x18] sm:$0xff] %v1669_v46  ;;  %3174 = vmatpush3.bf16.msra.mxu0 %v3362_v38 }
 0x45b   :  { %1671 = vst [vmem:[#allocation12 + $0x8] sm:$0xff] %v1667_v51  ;;  %3175 = vmatprep.subr.bf16.mxu0 %v3363_v45 }
 0x45e   :  { %3176 = vmatpush3.bf16.msra.mxu0 %v3363_v45 }
 0x45f   :  { %3177 = vmatprep.subr.bf16.mxu0 %v3364_v52 }
 0x462   :  { %3178 = vmatpush3.bf16.msra.mxu0 %v3364_v52 }
 0x465   :  { %3180 = vmatmul.mubr.msk.bf16.vlgmr.msra.gmra.mrb[24].mxu0 %vm2721_vm10, %v2722_v57 }
 0x466   :  { %3183 = vmatprep.mubr.bf16.mxu0 %v2065_v59 }
 0x46d   :  { %3184 = vmatmul.mubr.msk.bf16.gmra.mrb[28].mxu0 %vm2724_vm12, %v2725_v48 }
 0x46e   :  { %3464 = shalt.err (!%p3461_p8)
}
 0x46f   :  { %s3465_s30 = scalar_lea.hbm %s4125_s21, 512 }
 0x470   :  { %p3466_p9 = scmp.ne.s32.totalorder %s4125_s21, %s3465_s30  ;;  %p3469_p10 = scmp.lt.u32.totalorder %s3465_s30, %s4125_s21 }
 0x472   :  { %p3471_p11 = pnand %p3469_p10, %p3466_p9 }
 0x474   :  { %3474 = shalt.err (!%p3471_p11)
}
 0x475   :  { %s3563_s5 = smov 128   ;;  %s3564_s1 = smov 8  }
 0x476   :  { %2510 = dma.vmem_to_hbm [thread:$0]  %s2505_s12, 512, %s4125_s21, [#allocation13], %s3563_s5, %s3563_s5, %s3564_s1  }
 0x477   :  { %s3565_s6 = smov [#allocation14]   ;;  %s3566_s8 = smov [#allocation15]  }
 0x478   :  { %s2516_s16 = sshll.u32 %s3565_s6, 4  ;;  %s2529_s0 = sshll.u32 %s3566_s8, 4  ;;  %s2517_s16 = int_to_ptr.vmem [resolvable:$true] %s2516_s16  ;;  %s2530_s0 = int_to_ptr.vmem [resolvable:$true] %s2529_s0 }
 0x479   :  { %s3475_s27 = scalar_lea.vmem %s2517_s16, 256  ;;  %p3480_p13 = scmp.lt.s32.totalorder %s2517_s16, %s2517_s16 }
 0x47a   :  { %p3476_p12 = scmp.ne.s32.totalorder %s2517_s16, %s3475_s27  ;;  %p3481_p0 = scmp.lt.s32.totalorder %s3475_s27, %s3475_s27 }
 0x47c   :  { %p3482_p1 = por %p3481_p0, %p3480_p13 }
 0x47e   :  { %p3483_p2 = pnand %p3482_p1, %p3476_p12 }
 0x480   :  { %3486 = shalt.err (!%p3483_p2)
}
 0x481   :  { %s3487_s17 = scalar_lea.hbm %s4126_s22, 256 }
 0x482   :  { %p3488_p3 = scmp.ne.s32.totalorder %s4126_s22, %s3487_s17  ;;  %p3491_p4 = scmp.lt.u32.totalorder %s3487_s17, %s4126_s22 }
 0x484   :  { %p3493_p5 = pnand %p3491_p4, %p3488_p3 }
 0x486   :  { %3496 = shalt.err (!%p3493_p5)
}
 0x487   :  { %2522 = dma.vmem_to_hbm [thread:$0]  %s2517_s16, 256, %s4126_s22, [#allocation13], %s3563_s5, %s3563_s5, %s3564_s1  }
 0x488   :  { %s3497_s12 = scalar_lea.vmem %s2530_s0, 128  ;;  %p3502_p7 = scmp.lt.s32.totalorder %s2530_s0, %s2530_s0 }
 0x489   :  { %p3498_p6 = scmp.ne.s32.totalorder %s2530_s0, %s3497_s12  ;;  %p3503_p8 = scmp.lt.s32.totalorder %s3497_s12, %s3497_s12 }
 0x48b   :  { %p3504_p9 = por %p3503_p8, %p3502_p7 }
 0x48d   :  { %p3505_p10 = pnand %p3504_p9, %p3498_p6 }
 0x48f   :  { %3508 = shalt.err (!%p3505_p10)
}
 0x490   :  { %s3509_s14 = scalar_lea.hbm %s4127_s23, 128 }
 0x491   :  { %p3510_p11 = scmp.ne.s32.totalorder %s4127_s23, %s3509_s14  ;;  %p3513_p12 = scmp.lt.u32.totalorder %s3509_s14, %s4127_s23 }
 0x493   :  { %p3515_p13 = pnand %p3513_p12, %p3510_p11 }
 0x495   :  { %3518 = shalt.err (!%p3515_p13)
}
 0x496   :  { %2532 = dma.vmem_to_hbm [thread:$0]  %s2530_s0, 128, %s4127_s23, [#allocation16]   ;;  %v2727_v50 = vld [vmem:[%s4117_s13] ss:$0 sm:$0xff] }
 0x497   :  { %s3567_s23 = smov [#allocation11]  }
 0x498   :  { %s2492_s6 = sshll.u32 %s3567_s23, 4  ;;  %s2493_s6 = int_to_ptr.vmem [resolvable:$true] %s2492_s6 }
 0x499   :  { %s3519_s13 = scalar_lea.vmem %s2493_s6, 1024  ;;  %p3524_p1 = scmp.lt.s32.totalorder %s2493_s6, %s2493_s6 }
 0x49a   :  { %p3520_p0 = scmp.ne.s32.totalorder %s2493_s6, %s3519_s13  ;;  %p3525_p2 = scmp.lt.s32.totalorder %s3519_s13, %s3519_s13 }
 0x49c   :  { %p3526_p3 = por %p3525_p2, %p3524_p1 }
 0x49e   :  { %p3527_p4 = pnand %p3526_p3, %p3520_p0 }
 0x538   :  { %v3181_v62 = vpop.f32.mrb[24].mxu0 }
 0x539   :  { %v2473_v63 = vadd.f32 %v3181_v62, %v2727_v50  ;;  %v2425_v1 = vpop.f32.mrb[25].mxu0 }
 0x53a   :  { %v2471_v2 = vadd.f32 %v2727_v50, %v2425_v1  ;;  %v3182_v3 = vpop.f32.mrb[26].mxu0 }
 0x53b   :  { %2481 = vst [vmem:[#allocation11 + $0x10] sm:$0xff] %v2473_v63  ;;  %v2474_v4 = vadd.f32 %v3182_v3, %v2727_v50  ;;  %v2428_v5 = vpop.f32.mrb[27].mxu0 }
 0x53c   :  { %2479 = vst [vmem:[#allocation11] sm:$0xff] %v2471_v2  ;;  %v2472_v6 = vadd.f32 %v2727_v50, %v2428_v5 }
 0x53d   :  { %2482 = vst [vmem:[#allocation11 + $0x18] sm:$0xff] %v2474_v4 }
 0x53e   :  { %2480 = vst [vmem:[#allocation11 + $0x8] sm:$0xff] %v2472_v6 }
 0x540   :  { %v3185_v7 = vpop.f32.mrb[28].mxu0 }
 0x541   :  { %v2477_v8 = vadd.f32 %v3185_v7, %v2727_v50  ;;  %v2441_v9 = vpop.f32.mrb[29].mxu0 }
 0x542   :  { %v2475_v24 = vadd.f32 %v2727_v50, %v2441_v9  ;;  %v3186_v10 = vpop.f32.mrb[30].mxu0 }
 0x543   :  { %2485 = vst [vmem:[#allocation11 + $0x30] sm:$0xff] %v2477_v8  ;;  %v2478_v11 = vadd.f32 %v3186_v10, %v2727_v50  ;;  %v2444_v60 = vpop.f32.mrb[31].mxu0 }
 0x544   :  { %2483 = vst [vmem:[#allocation11 + $0x20] sm:$0xff] %v2475_v24  ;;  %v2476_v12 = vadd.f32 %v2727_v50, %v2444_v60 }
 0x545   :  { %2486 = vst [vmem:[#allocation11 + $0x38] sm:$0xff] %v2478_v11 }
 0x546   :  { %2484 = vst [vmem:[#allocation11 + $0x28] sm:$0xff] %v2476_v12 }
 0x547   :  { %3530 = shalt.err (!%p3527_p4)
}
 0x548   :  { %s3531_s0 = scalar_lea.hbm %s4124_s20, 1024 }
 0x549   :  { %p3532_p5 = scmp.ne.s32.totalorder %s4124_s20, %s3531_s0  ;;  %p3535_p6 = scmp.lt.u32.totalorder %s3531_s0, %s4124_s20 }
 0x54b   :  { %p3537_p7 = pnand %p3535_p6, %p3532_p5 }
 0x54d   :  { %3540 = shalt.err (!%p3537_p7)
}
 0x54e   :  { %2498 = dma.vmem_to_hbm [thread:$0]  %s2493_s6, 1024, %s4124_s20, [#allocation5], %s3563_s5, %s3563_s5, %s3564_s1  }
 0x54f   :  { %3547 = dma.done.wait [#allocation5], 1024  }
 0x550   :  { %3548 = vsyncadd [#allocation5], 4294966272 }
 0x551   :  { %3549 = dma.done.wait [#allocation13], 768  }
 0x552   :  { %3550 = vsyncadd [#allocation13], 4294966528 }
 0x553   :  { %3551 = dma.done.wait [#allocation16], 128  }
 0x554   :  { %3552 = vsyncadd [#allocation16], 4294967168 }
 0x555   :  { %2545 = vsyncpa [#allocation4], 1 }
 0x556   :  { %2546 = vsyncpa [#allocation7], 1 }
 0x557   :  { %2547 = vsyncpa [#allocation10], 1 }
 0x558   :  { %2548 = vsyncpa [#allocation5], 1 }
 0x559   :  { %2549 = vsyncpa [#allocation13], 1 }
 0x55a   :  { %2550 = vsyncpa [#allocation16], 1 }

</bundles_post_ra>
